<compile_context>
chip_gen: v7x
topology: tpu7x:2x2x1
jax: 0.10.0
libtpu: 0.0.40
codegen_flags: <defaults>
</compile_context>

<pallas_src>
import functools

import jax
import jax.numpy as jnp
import numpy as np
from jax.experimental import pallas as pl
from jax.experimental.pallas import tpu as pltpu


def _maxpool_kernel(x_ref, s_ref, o_ref, *, w, k, precision):
    """One row-tile of 2x2/stride-2 max pooling.

    x_ref: (tm, L) VMEM, L = k*2*w; each 2*w segment = [H-even row | H-odd row]
    s_ref: (c_in, k*wo) VMEM 0/1 selection matrix (c_in = w if k == 1 else L)
    o_ref: (tm, k*wo) VMEM pooled outputs (lane-dense)
    """
    y = x_ref[...]
    n_lanes = y.shape[-1]                                   # static: k*2*w
    if k == 1:
        # H-pair max via contiguous lane halves (no cross-lane movement).
        h = jnp.maximum(y[:, :w], y[:, w:])                 # (tm, w)
    else:
        # H-pair max: lane p of each 2w segment vs lane p+w of the same
        # segment (positive-shift roll == roll by -w; XLU slot).
        h = jnp.maximum(y, pltpu.roll(y, n_lanes - w, 1))   # (tm, L)
    # W-pair max (roll by -1): the full 2x2 max lands on even lane positions.
    m = jnp.maximum(h, pltpu.roll(h, h.shape[-1] - 1, 1))
    s = s_ref[...]
    if m.dtype != s.dtype:
        m = m.astype(s.dtype)
    # Single 0/1 selection matmul compacts the wanted lanes (exact: exactly
    # one 1.0 per output column; fp32 uses HIGHEST, bf16 stays bf16).
    out = jnp.dot(m, s, preferred_element_type=jnp.float32, precision=precision)
    o_ref[...] = out.astype(o_ref.dtype)


def _pick_tm(m_rows, per_row_bytes, budget_bytes):
    """Row-tile size.  Returns (tm, divides_exactly)."""
    if m_rows * per_row_bytes <= budget_bytes:
        return m_rows, True
    limit = min(m_rows, max(8, budget_bytes // per_row_bytes))
    limit -= limit % 8
    limit = max(limit, 8)
    for tm in range(limit, 7, -8):   # largest multiple-of-8 divisor that fits
        if m_rows % tm == 0:
            return tm, True
    # No friendly divisor: cdiv grid; Pallas masks the partial trailing block.
    return limit, False


def maxpool2d_2x2(x, *, vmem_budget_bytes=24 << 20):
    """nn.MaxPool2d(2) forward: (N, C, H, W) -> (N, C, H//2, W//2)."""
    n, c, h, w = x.shape
    ho, wo = h // 2, w // 2
    if ho == 0 or wo == 0:
        return jnp.zeros((n, c, ho, wo), dtype=x.dtype)
    if (2 * ho, 2 * wo) != (h, w):
        # Floor mode drops a trailing odd row/col (odd shapes only; this slice
        # costs one extra HBM copy — even shapes stay zero-copy).
        x = x[:, :, : 2 * ho, : 2 * wo]
    h, w = 2 * ho, 2 * wo

    itemsize = jnp.dtype(x.dtype).itemsize
    n_pairs = n * c * ho                        # total H row-pairs

    # Fold k row-pairs per lane row so the output row is ~128 lanes wide
    # (unmasked vst); k must divide the total number of row-pairs.
    k = 1
    if wo < 128:
        target = max(1, 128 // wo)
        while 2 * k <= target and n_pairs % (2 * k) == 0:
            k *= 2

    lanes_in = k * 2 * w                        # folded input row length
    lanes_out = k * wo                          # folded output row length
    m_rows = n_pairs // k

    # dtype strategy for the selection matmul.
    if x.dtype == jnp.bfloat16:
        mat_dtype, precision = jnp.bfloat16, None
    else:
        mat_dtype, precision = jnp.float32, jax.lax.Precision.HIGHEST

    # 0/1 selection matrix (one 1.0 per output column).
    c_in = w if k == 1 else lanes_in
    rows = np.arange(c_in)[:, None]
    cols = np.arange(lanes_out)[None, :]
    if k == 1:
        sel = rows == 2 * cols
    else:
        sel = (rows // (2 * w) == cols // wo) & (rows % (2 * w) == 2 * (cols % wo))
    s_mat = jnp.asarray(sel.astype(np.float32)).astype(mat_dtype)
    # NOTE: for wo >= 128 the (w, wo) matrix grows ~w^2/2; beyond w ~ 4096 fp32
    # the W axis itself would need tiling (not needed for UNet-scale shapes).

    # VMEM accounting: double-buffered input/output blocks + resident weights
    # + in-kernel temporaries (h, m, f32 matmul result).
    mat_isz = jnp.dtype(mat_dtype).itemsize
    per_row = (2 * lanes_in * itemsize
               + 2 * lanes_out * itemsize
               + 2 * lanes_in * max(itemsize, mat_isz)
               + lanes_out * 4)
    fixed = 2 * c_in * lanes_out * mat_isz
    tm, exact = _pick_tm(m_rows, per_row, max(vmem_budget_bytes - fixed, per_row))
    if exact and tm == m_rows and m_rows % 16 == 0:
        tm = m_rows // 2                        # >= 2 grid steps for v7x megacore
    grid = (m_rows // tm,) if exact else (pl.cdiv(m_rows, tm),)
    est_vmem = fixed + tm * per_row
    vmem_limit = int(max(32 << 20, min(est_vmem + (8 << 20), 100 << 20)))

    xr = x.reshape(m_rows, lanes_in)            # free, contiguous reshape

    kernel = functools.partial(_maxpool_kernel, w=w, k=k, precision=precision)
    out = pl.pallas_call(
        kernel,
        out_shape=jax.ShapeDtypeStruct((m_rows, lanes_out), x.dtype),
        grid_spec=pltpu.PrefetchScalarGridSpec(
            num_scalar_prefetch=0,
            grid=grid,
            in_specs=[
                pl.BlockSpec((tm, lanes_in), lambda i: (i, 0)),
                pl.BlockSpec((c_in, lanes_out), lambda i: (0, 0)),  # resident RHS
            ],
            out_specs=pl.BlockSpec((tm, lanes_out), lambda i: (i, 0)),
        ),
        compiler_params=pltpu.CompilerParams(
            dimension_semantics=("parallel",),
            vmem_limit_bytes=vmem_limit),
    )(xr, s_mat)

    return out.reshape(n, c, ho, wo)            # free, contiguous reshape


def _maxpool_ref(x):
    n, c, h, w = x.shape
    ho, wo = h // 2, w // 2
    x = x[:, :, : 2 * ho, : 2 * wo]
    return jnp.max(x.reshape(n, c, ho, 2, wo, 2), axis=(3, 5))


if __name__ == "__main__":
    key = jax.random.PRNGKey(0)
    N, C, H, W = 2, 4, 16, 16
    x = jax.random.normal(key, (N, C, H, W), dtype=jnp.float32)

    out = jax.block_until_ready(maxpool2d_2x2(x))
    ref = _maxpool_ref(x)

    assert out.shape == (N, C, H // 2, W // 2)
    assert jnp.allclose(out, ref, atol=1e-6, rtol=0), "mismatch vs reference"
    print("KERNEL_OK")
</pallas_src>

<mosaic_0001>
module attributes {stable_mosaic.version = 11 : i64} {
  func.func @_maxpool_kernel(%arg0: i32, %arg1: memref<4x512xf32, #tpu.memory_space<vmem>>, %arg2: memref<512x128xf32, #tpu.memory_space<vmem>>, %arg3: memref<4x128xf32, #tpu.memory_space<vmem>>) attributes {dimension_semantics = [#tpu.dimension_semantics<parallel>], iteration_bounds = array<i64: 1>, scalar_prefetch = 0 : i64, scratch_operands = 0 : i64, tpu.core_type = #tpu.core_type<tc>, window_params = [{transform_indices = @transform_0, window_bounds = array<i64: 4, 512>}, {pipeline_mode = #tpu.pipeline_mode<synchronous>, transform_indices = @transform_1, window_bounds = array<i64: 512, 128>}, {transform_indices = @transform_2, window_bounds = array<i64: 4, 128>}]} {
    %c0 = arith.constant 0 : index
    %c0_0 = arith.constant 0 : index
    %0 = vector.load %arg1[%c0, %c0_0] : memref<4x512xf32, #tpu.memory_space<vmem>>, vector<4x512xf32>
    %c496_i32 = arith.constant 496 : i32
    %1 = tpu.dynamic_rotate %0 by %c496_i32 dim 1 : vector<4x512xf32>, i32 -> vector<4x512xf32>
    %2 = arith.maximumf %0, %1 : vector<4x512xf32>
    %c511_i32 = arith.constant 511 : i32
    %3 = tpu.dynamic_rotate %2 by %c511_i32 dim 1 : vector<4x512xf32>, i32 -> vector<4x512xf32>
    %4 = arith.maximumf %2, %3 : vector<4x512xf32>
    %c0_1 = arith.constant 0 : index
    %c0_2 = arith.constant 0 : index
    %5 = vector.load %arg2[%c0_1, %c0_2] : memref<512x128xf32, #tpu.memory_space<vmem>>, vector<512x128xf32>
    %cst = arith.constant dense<0.000000e+00> : vector<4x128xf32>
    %6 = tpu.matmul %4, %5, %cst {dimension_numbers = #tpu.dot_dimension_numbers<[1], [0], [0], [1], [0, 0, 1, 1], [], []>, precision = #tpu.contract_precision<fp32>} : vector<4x512xf32>, vector<512x128xf32>, vector<4x128xf32> -> vector<4x128xf32>
    %c0_3 = arith.constant 0 : index
    %c0_4 = arith.constant 0 : index
    %7 = vector.load %arg3[%c0_3, %c0_4] : memref<4x128xf32, #tpu.memory_space<vmem>>, vector<4x128xf32>
    tpu.vector_store %arg3[%c0_3, %c0_4], %6 {strides = array<i32>} : memref<4x128xf32, #tpu.memory_space<vmem>>, vector<4x128xf32>,
    return
  }
  func.func @transform_0(%arg0: i32) -> (i32, i32) {
    %c0_i32 = arith.constant 0 : i32
    %c0_i32_0 = arith.constant 0 : i32
    return %arg0, %c0_i32 : i32, i32
  }
  func.func @transform_1(%arg0: i32) -> (i32, i32) {
    %c0_i32 = arith.constant 0 : i32
    %c0_i32_0 = arith.constant 0 : i32
    %c0_i32_1 = arith.constant 0 : i32
    return %c0_i32, %c0_i32_0 : i32, i32
  }
  func.func @transform_2(%arg0: i32) -> (i32, i32) {
    %c0_i32 = arith.constant 0 : i32
    %c0_i32_0 = arith.constant 0 : i32
    return %arg0, %c0_i32 : i32, i32
  }
}

</mosaic_0001>

<bundles_post_ra>
// kernel: tpu_custom_call.1
= control target key start
LH: loop header
LB: loop body
LE: loop exit
PB: predicated region body
PF: predicated region fallthrough
CT: control target
= control target key end

     0   :  { %7 = vsyncpa [#allocation3], 0  ;;  %s4192_s0 = inlined_call_operand.hbm [shape: f32[4,512], index: 0, kind: input, shape index: {}]   ;;  %s4193_s1 = inlined_call_operand.hbm [shape: f32[512,128], index: 1, kind: input, shape index: {}]   ;;  %s4194_s2 = inlined_call_operand.hbm [shape: f32[4,128], index: 2, kind: output, shape index: {}]  }
   0x1   :  { %8 = vsyncpa [#allocation6], 0 }
   0x2   :  { %9 = vsyncpa [#allocation4], 0  ;;  %s2796_s9 = smov [#allocation2]   ;;  %s2797_s11 = smov [#allocation5]  }
   0x3   :  { %s16_s10 = sshll.u32 %s2796_s9, 4  ;;  %s25_s12 = sshll.u32 %s2797_s11, 4  ;;  %s17_s10 = int_to_ptr.vmem [resolvable:$true] %s16_s10  ;;  %s2818_s12 = int_to_ptr.vmem [resolvable:$true] %s25_s12 }
   0x4   :  { %s2724_s15 = scalar_lea.hbm %s4192_s0, 256 }
   0x5   :  { %p2725_p0 = scmp.ne.s32.totalorder %s4192_s0, %s2724_s15  ;;  %p2728_p1 = scmp.lt.u32.totalorder %s2724_s15, %s4192_s0 }
   0x7   :  { %p2730_p2 = pnand %p2728_p1, %p2725_p0 }
   0x9   :  { %2733 = shalt.err (!%p2730_p2)
}
   0xa   :  { %s2734_s20 = scalar_lea.vmem %s17_s10, 256  ;;  %p2739_p4 = scmp.lt.s32.totalorder %s17_s10, %s17_s10 }
   0xb   :  { %p2735_p3 = scmp.ne.s32.totalorder %s17_s10, %s2734_s20  ;;  %p2740_p5 = scmp.lt.s32.totalorder %s2734_s20, %s2734_s20 }
   0xd   :  { %p2741_p6 = por %p2740_p5, %p2739_p4 }
   0xf   :  { %p2742_p7 = pnand %p2741_p6, %p2735_p3 }
  0x11   :  { %2745 = shalt.err (!%p2742_p7)
}
  0x12   :  { %19 = dma.hbm_to_vmem [thread:$0]  %s4192_s0, 256, %s17_s10, [#allocation3]  }
  0x13   :  { %s2746_s25 = scalar_lea.hbm %s4193_s1, 8192 }
  0x14   :  { %p2747_p8 = scmp.ne.s32.totalorder %s4193_s1, %s2746_s25  ;;  %p2750_p9 = scmp.lt.u32.totalorder %s2746_s25, %s4193_s1 }
  0x16   :  { %p2752_p10 = pnand %p2750_p9, %p2747_p8 }
  0x18   :  { %2755 = shalt.err (!%p2752_p10)
}
  0x19   :  { %s2756_s30 = scalar_lea.vmem %s2818_s12, 8192  ;;  %p2761_p12 = scmp.lt.s32.totalorder %s2818_s12, %s2818_s12 }
  0x1a   :  { %p2757_p11 = scmp.ne.s32.totalorder %s2818_s12, %s2756_s30  ;;  %p2762_p13 = scmp.lt.s32.totalorder %s2756_s30, %s2756_s30 }
  0x1c   :  { %p2763_p0 = por %p2762_p13, %p2761_p12 }
  0x1e   :  { %p2764_p1 = pnand %p2763_p0, %p2757_p11 }
  0x20   :  { %2767 = shalt.err (!%p2764_p1)
}
  0x21   :  { %s2798_s0 = smov 128   ;;  %s2799_s3 = smov 8  }
  0x22   :  { %31 = dma.hbm_to_vmem [thread:$0]  %s4193_s1, 8192, %s2818_s12, [#allocation6], %s2798_s0, %s2798_s0, %s2799_s3  }
  0x23   :  { %2790 = dma.done.wait [#allocation3], 256  }
  0x24   :  { %2791 = vsyncadd [#allocation3], 4294967040 }
  0x25   :  { %2792 = dma.done.wait [#allocation6], 8192  }
  0x26   :  { %2793 = vsyncadd [#allocation6], 4294959104  ;;  %v2849_v0 = vld [vmem:[#allocation2 + $0x8] sm:$0xff]  ;;  %v2851_v1 = vld [vmem:[#allocation2] sm:$0xff]  ;;  %s2800_s6 = smov 112   ;;  %s2801_s1 = smov 127  }
  0x27   :  { %50 = vrot.lane.b32.xlu1 %v2849_v0, %s2800_s6  ;;  %46 = vrot.lane.b32.xlu0 %v2851_v1, %s2800_s6  ;;  %v43_v2 = vcombine.high %v2849_v0, %v2849_v0  ;;  %v42_v3 = vcombine.high %v2851_v1, %v2851_v1  ;;  %v116_v4 = vld [vmem:[#allocation5 + $0x80] sm:$0xff]  ;;  %v117_v5 = vld [vmem:[#allocation5 + $0x88] sm:$0xff]  ;;  %v2862_v11 = vld [vmem:[#allocation5 + $0x90] sm:$0xff]  ;;  %s2802_s7 = smov [#allocation7]  }
  0x28   :  { %v2859_v6 = vld [vmem:[#allocation5] sm:$0xff]  ;;  %v219_v7 = vand.u32 4294901760, %v116_v4  ;;  %v222_v8 = vand.u32 4294901760, %v117_v5  ;;  %v101_v9 = vld [vmem:[#allocation5 + $0x8] sm:$0xff]  ;;  %v2864_v12 = vld [vmem:[#allocation5 + $0x98] sm:$0xff]  ;;  %v225_v14 = vand.u32 4294901760, %v2862_v11 }
  0x29   :  { %v171_v10 = vand.u32 4294901760, %v2859_v6  ;;  %v174_v13 = vand.u32 4294901760, %v101_v9  ;;  %v228_v15 = vand.u32 4294901760, %v2864_v12  ;;  %v2868_v16 = vld [vmem:[#allocation5 + $0x10] sm:$0xff]  ;;  %v2870_v17 = vld [vmem:[#allocation5 + $0x18] sm:$0xff]  ;;  %v2923_v42 = vld [vmem:[#allocation5 + $0xa0] sm:$0xff] }
  0x2a   :  { %v2872_v18 = vsub.f32 %v116_v4, %v219_v7  ;;  %v2874_v19 = vsub.f32 %v117_v5, %v222_v8  ;;  %v177_v21 = vand.u32 4294901760, %v2868_v16  ;;  %v2883_v23 = vsub.f32 %v2862_v11, %v225_v14  ;;  %v2928_v47 = vld [vmem:[#allocation5 + $0xa8] sm:$0xff]  ;;  %v2933_v52 = vld [vmem:[#allocation5 + $0x20] sm:$0xff]  ;;  %v2940_v58 = vld [vmem:[#allocation5 + $0xb0] sm:$0xff]  ;;  %s1901_s8 = sshll.u32 %s2802_s7, 4  ;;  %s1902_s8 = int_to_ptr.vmem [resolvable:$true] %s1901_s8 }
  0x2b   :  { %52 = vrot.lane.b32.xlu1 %v43_v2, %s2800_s6  ;;  %48 = vrot.lane.b32.xlu0 %v42_v3, %s2800_s6  ;;  %v2877_v20 = vsub.f32 %v2859_v6, %v171_v10  ;;  %v2880_v22 = vsub.f32 %v101_v9, %v174_v13  ;;  %v2886_v24 = vsub.f32 %v2864_v12, %v228_v15  ;;  %v180_v25 = vand.u32 4294901760, %v2870_v17  ;;  %v2935_v53 = vld [vmem:[#allocation5 + $0x28] sm:$0xff]  ;;  %v2943_v63 = vld [vmem:[#allocation5 + $0xb8] sm:$0xff]  ;;  %v2953_v6 = vld [vmem:[#allocation5 + $0x30] sm:$0xff]  ;;  %s2768_s9 = scalar_lea.vmem %s1902_s8, 64  ;;  %p2773_p3 = scmp.lt.s32.totalorder %s1902_s8, %s1902_s8 }
  0x2c   :  { %v4214_v26 = vand.u32 4294901760, %v2872_v18  ;;  %v4213_v27 = vand.u32 4294901760, %v2874_v19  ;;  %v2895_v29 = vsub.f32 %v2868_v16, %v177_v21  ;;  %v4210_v31 = vand.u32 4294901760, %v2883_v23  ;;  %p2769_p2 = scmp.ne.s32.totalorder %s1902_s8, %s2768_s9  ;;  %p2774_p4 = scmp.lt.s32.totalorder %s2768_s9, %s2768_s9 }
  0x2d   :  { %v4212_v28 = vand.u32 4294901760, %v2877_v20  ;;  %v4211_v30 = vand.u32 4294901760, %v2880_v22  ;;  %v4207_v32 = vand.u32 4294901760, %v2886_v24  ;;  %v2901_v33 = vsub.f32 %v2870_v17, %v180_v25 }
  0x2e   :  { %v398_v34 = vsub.f32 %v2872_v18, %v4214_v26  ;;  %v405_v35 = vsub.f32 %v2874_v19, %v4213_v27  ;;  %v4205_v37 = vand.u32 4294901760, %v2895_v29  ;;  %v412_v39 = vsub.f32 %v2883_v23, %v4210_v31  ;;  %v3125_v26 = vld [vmem:[#allocation5 + $0x60] sm:$0xff]  ;;  %p2775_p5 = por %p2774_p4, %p2773_p3 }
  0x2f   :  { %v286_v36 = vsub.f32 %v2877_v20, %v4212_v28  ;;  %v293_v38 = vsub.f32 %v2880_v22, %v4211_v30  ;;  %v419_v40 = vsub.f32 %v2886_v24, %v4207_v32  ;;  %v4203_v41 = vand.u32 4294901760, %v2901_v33  ;;  %v3087_v32 = vld [vmem:[#allocation5 + $0xd8] sm:$0xff] }
  0x30   :  { %v399_v43 = vand.u32 4294901760, %v398_v34  ;;  %v406_v44 = vand.u32 4294901760, %v405_v35  ;;  %v300_v46 = vsub.f32 %v2895_v29, %v4205_v37  ;;  %v413_v49 = vand.u32 4294901760, %v412_v39  ;;  %v2970_v34 = vld [vmem:[#allocation5 + $0x38] sm:$0xff]  ;;  %p2776_p6 = pnand %p2775_p5, %p2769_p2 }
  0x31   :  { %v287_v45 = vand.u32 4294901760, %v286_v36  ;;  %v294_v48 = vand.u32 4294901760, %v293_v38  ;;  %v420_v50 = vand.u32 4294901760, %v419_v40  ;;  %v307_v51 = vsub.f32 %v2901_v33, %v4203_v41 }
  0x32   :  { %v2363_v54 = vpack.c.bf16 %v406_v44, %v399_v43  ;;  %v301_v55 = vand.u32 4294901760, %v300_v46  ;;  %v2937_v56 = vpack.c.bf16 %v222_v8, %v219_v7  ;;  %v231_v57 = vand.u32 4294901760, %v2923_v42 }
  0x33   :  { %v2365_v59 = vpack.c.bf16 %v294_v48, %v287_v45  ;;  %v2367_v60 = vpack.c.bf16 %v420_v50, %v413_v49  ;;  %v308_v61 = vand.u32 4294901760, %v307_v51  ;;  %v234_v62 = vand.u32 4294901760, %v2928_v47 }
  0x34   :  { %2364 = vmatprep.subr.bf16.mxu1 %v2363_v54  ;;  %2332 = vmatprep.subr.bf16.mxu0 %v2937_v56  ;;  %v2947_v2 = vsub.f32 %v2923_v42, %v231_v57  ;;  %v2949_v3 = vpack.c.bf16 %v174_v13, %v171_v10  ;;  %v183_v4 = vand.u32 4294901760, %v2933_v52  ;;  %v186_v5 = vand.u32 4294901760, %v2935_v53 }
  0x35   :  { %2366 = vmatpush3.bf16.msra.mxu1 %v2365_v59  ;;  %v2369_v7 = vpack.c.bf16 %v308_v61, %v301_v55  ;;  %v2956_v8 = vsub.f32 %v2928_v47, %v234_v62  ;;  %v2958_v9 = vpack.c.bf16 %v228_v15, %v225_v14  ;;  %v4230_v11 = vand.u32 4294901760, %v2940_v58  ;;  %v3030_v61 = vld [vmem:[#allocation5 + $0x40] sm:$0xff] }
  0x36   :  { %2368 = vmatprep.subr.bf16.mxu1 %v2367_v60  ;;  %v4202_v12 = vand.u32 4294901760, %v2947_v2  ;;  %2334 = vmatpush3.bf16.msra.mxu0 %v2949_v3  ;;  %v2964_v10 = vsub.f32 %v2933_v52, %v183_v4  ;;  %v2967_v13 = vsub.f32 %v2935_v53, %v186_v5  ;;  %v4229_v17 = vand.u32 4294901760, %v2943_v63  ;;  %v3021_v52 = vld [vmem:[#allocation5 + $0xc0] sm:$0xff]  ;;  %v3023_v53 = vld [vmem:[#allocation5 + $0xc8] sm:$0xff] }
  0x37   :  { %v4201_v14 = vand.u32 4294901760, %v2956_v8  ;;  %2336 = vmatprep.subr.bf16.mxu0 %v2958_v9  ;;  %v2977_v15 = vsub.f32 %v2940_v58, %v4230_v11  ;;  %v2981_v35 = vpack.c.bf16 %v180_v25, %v177_v21  ;;  %v4224_v36 = vand.u32 4294901760, %v2953_v6 }
  0x38   :  { %4327 = vst [vmem:[#allocation11_spill] sm:$0xff] %v2964_v10  ;;  %4328 = vst [vmem:[#allocation12_spill] sm:$0xff] %v2967_v13  ;;  %v426_v38 = vsub.f32 %v2947_v2, %v4202_v12  ;;  %v4200_v39 = vand.u32 4294901760, %v2964_v10  ;;  %v4196_v40 = vand.u32 4294901760, %v2967_v13  ;;  %v2992_v42 = vsub.f32 %v2943_v63, %v4229_v17 }
  0x39   :  { %4329 = vst [vmem:[#allocation13_spill] sm:$0xff] %v2977_v15  ;;  %2370 = vmatpush3.bf16.msra.mxu1 %v2369_v7  ;;  %v433_v16 = vsub.f32 %v2956_v8, %v4201_v14  ;;  %v4195_v21 = vand.u32 4294901760, %v2977_v15  ;;  %v4223_v25 = vand.u32 4294901760, %v2970_v34  ;;  %v3002_v43 = vsub.f32 %v2953_v6, %v4224_v36 }
  0x3a   :  { %4330 = vst [vmem:[#allocation14_spill] sm:$0xff] %v2992_v42  ;;  %v427_v44 = vand.u32 4294901760, %v426_v38  ;;  %v314_v45 = vsub.f32 %v2964_v10, %v4200_v39  ;;  %v321_v46 = vsub.f32 %v2967_v13, %v4196_v40  ;;  %v4197_v47 = vand.u32 4294901760, %v2992_v42  ;;  %2338 = vmatpush3.bf16.msra.mxu0 %v2981_v35  ;;  %v3036_v40 = vld [vmem:[#allocation5 + $0x48] sm:$0xff] }
  0x3b   :  { %4331 = vst [vmem:[#allocation15_spill] sm:$0xff] %v3002_v43  ;;  %v434_v48 = vand.u32 4294901760, %v433_v16  ;;  %v440_v49 = vsub.f32 %v2977_v15, %v4195_v21  ;;  %v4198_v50 = vand.u32 4294901760, %v3002_v43  ;;  %v3019_v51 = vsub.f32 %v2970_v34, %v4223_v25 }
  0x3c   :  { %v315_v54 = vand.u32 4294901760, %v314_v45  ;;  %v322_v55 = vand.u32 4294901760, %v321_v46  ;;  %v447_v59 = vsub.f32 %v2992_v42, %v4197_v47  ;;  %v3028_v60 = vpack.c.bf16 %v234_v62, %v231_v57 }
  0x3d   :  { %4332 = vst [vmem:[#allocation16_spill] sm:$0xff] %v3019_v51  ;;  %v2371_v7 = vpack.c.bf16 %v434_v48, %v427_v44  ;;  %v441_v38 = vand.u32 4294901760, %v440_v49  ;;  %v328_v16 = vsub.f32 %v3002_v43, %v4198_v50  ;;  %v4199_v21 = vand.u32 4294901760, %v3019_v51 }
  0x3e   :  { %v2373_v45 = vpack.c.bf16 %v322_v55, %v315_v54  ;;  %v448_v46 = vand.u32 4294901760, %v447_v59  ;;  %2340 = vmatprep.subr.bf16.mxu0 %v3028_v60  ;;  %v4222_v47 = vand.u32 4294901760, %v3021_v52  ;;  %v4221_v57 = vand.u32 4294901760, %v3023_v53 }
  0x3f   :  { %2372 = vmatprep.subr.bf16.mxu1 %v2371_v7  ;;  %v329_v62 = vand.u32 4294901760, %v328_v16  ;;  %v335_v44 = vsub.f32 %v3019_v51, %v4199_v21  ;;  %v3044_v48 = vpack.c.bf16 %v186_v5, %v183_v4  ;;  %v4220_v49 = vand.u32 4294901760, %v3030_v61 }
  0x40   :  { %2374 = vmatpush3.bf16.msra.mxu1 %v2373_v45  ;;  %v2375_v50 = vpack.c.bf16 %v448_v46, %v441_v38  ;;  %v3050_v54 = vsub.f32 %v3021_v52, %v4222_v47  ;;  %v3055_v55 = vsub.f32 %v3023_v53, %v4221_v57  ;;  %v4219_v59 = vand.u32 4294901760, %v3036_v40 }
  0x41   :  { %v336_v7 = vand.u32 4294901760, %v335_v44  ;;  %2342 = vmatpush3.bf16.msra.mxu0 %v3044_v48  ;;  %v3062_v4 = vsub.f32 %v3030_v61, %v4220_v49  ;;  %v4347_v42 = vand.u32 4294901760, %v3023_v53  ;;  %v4350_v10 = vand.u32 4294901760, %v3036_v40 }
  0x42   :  { %4333 = vst [vmem:[#allocation17_spill] sm:$0xff] %v3050_v54  ;;  %4334 = vst [vmem:[#allocation18_spill] sm:$0xff] %v3055_v55  ;;  %2376 = vmatprep.subr.bf16.mxu1 %v2375_v50  ;;  %v4204_v5 = vand.u32 4294901760, %v3050_v54  ;;  %v4206_v38 = vand.u32 4294901760, %v3055_v55  ;;  %v3069_v16 = vsub.f32 %v3036_v40, %v4219_v59 }
  0x43   :  { %4335 = vst [vmem:[#allocation19_spill] sm:$0xff] %v3062_v4  ;;  %v2377_v45 = vpack.c.bf16 %v336_v7, %v329_v62  ;;  %v4208_v46 = vand.u32 4294901760, %v3062_v4 }
  0x44   :  { %4336 = vst [vmem:[#allocation20_spill] sm:$0xff] %v3069_v16  ;;  %v454_v44 = vsub.f32 %v3050_v54, %v4204_v5  ;;  %v461_v50 = vsub.f32 %v3055_v55, %v4206_v38  ;;  %v4209_v21 = vand.u32 4294901760, %v3069_v16  ;;  %v3085_v38 = vld [vmem:[#allocation5 + $0xd0] sm:$0xff]  ;;  %v3186_v55 = vld [vmem:[#allocation5 + $0x78] sm:$0xff] }
  0x45   :  { %2378 = vmatpush3.bf16.msra.mxu1 %v2377_v45  ;;  %v342_v39 = vsub.f32 %v3062_v4, %v4208_v46  ;;  %v4218_v45 = vand.u32 4294901760, %v3085_v38  ;;  %v4216_v46 = vand.u32 4294901760, %v3087_v32  ;;  %v3169_v54 = vld [vmem:[#allocation5 + $0xf0] sm:$0xff] }
  0x46   :  { %v455_v14 = vand.u32 4294901760, %v454_v44  ;;  %v462_v12 = vand.u32 4294901760, %v461_v50  ;;  %v349_v62 = vsub.f32 %v3069_v16, %v4209_v21  ;;  %v3091_v44 = vld [vmem:[#allocation5 + $0x50] sm:$0xff]  ;;  %v3093_v50 = vld [vmem:[#allocation5 + $0x58] sm:$0xff] }
  0x47   :  { %v343_v7 = vand.u32 4294901760, %v342_v39  ;;  %v4215_v21 = vand.u32 4294901760, %v3091_v44 }
  0x48   :  { %v2379_v41 = vpack.c.bf16 %v462_v12, %v455_v14  ;;  %v350_v5 = vand.u32 4294901760, %v349_v62  ;;  %v4217_v12 = vand.u32 4294901760, %v3093_v50  ;;  %v54_v14 = vlaneseq  ;;  %v3117_v62 = vld [vmem:[#allocation5 + $0xe0] sm:$0xff] }
  0x49   :  { %v3110_v39 = vsub.f32 %v3091_v44, %v4215_v21  ;;  %v4227_v28 = vand.u32 4294901760, %v3117_v62  ;;  %v3127_v21 = vld [vmem:[#allocation5 + $0x68] sm:$0xff] }
  0x4a   :  { %2380 = vmatprep.subr.bf16.mxu1 %v2379_v41  ;;  %v2381_v37 = vpack.c.bf16 %v350_v5, %v343_v7  ;;  %v3105_v41 = vsub.f32 %v3087_v32, %v4216_v46  ;;  %v3115_v5 = vsub.f32 %v3093_v50, %v4217_v12  ;;  %v3119_v7 = vld [vmem:[#allocation5 + $0xe8] sm:$0xff]  ;;  %v4244_v59 = vand.u32 4294901760, %v3127_v21 }
  0x4b   :  { %v4228_v27 = vand.u32 4294901760, %v3119_v7  ;;  %v4231_v46 = vand.u32 4294901760, %v3110_v39  ;;  %v3142_v47 = vsub.f32 %v3117_v62, %v4227_v28  ;;  %v3173_v51 = vand.u32 127, %v54_v14 }
  0x4c   :  { %2382 = vmatpush3.bf16.msra.mxu1 %v2381_v37  ;;  %v3100_v37 = vsub.f32 %v3085_v38, %v4218_v45  ;;  %v4226_v30 = vand.u32 4294901760, %v3105_v41  ;;  %v4236_v12 = vand.u32 4294901760, %v3115_v5  ;;  %v4241_v45 = vand.u32 4294901760, %v3125_v26 }
  0x4d   :  { %v3147_v25 = vsub.f32 %v3119_v7, %v4228_v27  ;;  %v356_v36 = vsub.f32 %v3110_v39, %v4231_v46  ;;  %v3163_v28 = vsub.f32 %v3127_v21, %v4244_v59  ;;  %v4337_v59 = vand.u32 4294901760, %v2940_v58 }
  0x4e   :  { %v4225_v31 = vand.u32 4294901760, %v3100_v37  ;;  %v475_v57 = vsub.f32 %v3105_v41, %v4226_v30  ;;  %v3158_v30 = vsub.f32 %v3125_v26, %v4241_v45  ;;  %v3171_v45 = vld [vmem:[#allocation5 + $0xf8] sm:$0xff]  ;;  %v4340_v46 = vand.u32 4294901760, %v2953_v6 }
  0x4f   :  { %v357_v16 = vand.u32 4294901760, %v356_v36  ;;  %v4339_v36 = vand.u32 4294901760, %v3142_v47  ;;  %v4341_v14 = vand.u32 4294901760, %v2970_v34  ;;  %v261_v34 = vand.u32 4294901760, %v3169_v54 }
  0x50   :  { %v468_v49 = vsub.f32 %v3100_v37, %v4225_v31  ;;  %v363_v31 = vsub.f32 %v3115_v5, %v4236_v12  ;;  %v476_v17 = vand.u32 4294901760, %v475_v57  ;;  %v4338_v57 = vand.u32 4294901760, %v2943_v63  ;;  %v3184_v12 = vld [vmem:[#allocation5 + $0x70] sm:$0xff] }
  0x51   :  { %v3192_v43 = vpack.c.bf16 %v4341_v14, %v4340_v46  ;;  %v4343_v63 = vand.u32 4294901760, %v3147_v25  ;;  %v213_v14 = vand.u32 4294901760, %v3184_v12  ;;  %v3216_v13 = vsub.f32 %v3169_v54, %v261_v34 }
  0x52   :  { %v469_v27 = vand.u32 4294901760, %v468_v49  ;;  %v364_v4 = vand.u32 4294901760, %v363_v31  ;;  %v3179_v49 = vpack.c.bf16 %v4338_v57, %v4337_v59  ;;  %v482_v31 = vsub.f32 %v3142_v47, %v4339_v36 }
  0x53   :  { %4342 = vst [vmem:[#allocation21_spill] sm:$0xff] %v3192_v43  ;;  %v489_v59 = vsub.f32 %v3147_v25, %v4343_v63  ;;  %v4345_v36 = vand.u32 4294901760, %v3163_v28  ;;  %v216_v63 = vand.u32 4294901760, %v3186_v55  ;;  %vm56_vm0 = vcmp.lt.s32.totalorder %v3173_v51, 112 }
  0x54   :  { %v2383_v11 = vpack.c.bf16 %v476_v17, %v469_v27  ;;  %v2385_v58 = vpack.c.bf16 %v364_v4, %v357_v16  ;;  %v4344_v27 = vand.u32 4294901760, %v3158_v30  ;;  %2344 = vmatprep.subr.bf16.mxu0 %v3179_v49  ;;  %v483_v57 = vand.u32 4294901760, %v482_v31 }
  0x55   :  { %v377_v6 = vsub.f32 %v3163_v28, %v4345_v36  ;;  %v264_v4 = vand.u32 4294901760, %v3171_v45  ;;  %2346 = vmatpush3.bf16.msra.mxu0 %v3192_v43  ;;  %v490_v16 = vand.u32 4294901760, %v489_v59  ;;  %v4346_v31 = vand.u32 4294901760, %v3021_v52 }
  0x56   :  { %v370_v17 = vsub.f32 %v3158_v30, %v4344_v27  ;;  %2384 = vmatprep.subr.bf16.mxu1 %v2383_v11  ;;  %v3228_v52 = vsub.f32 %v3184_v12, %v213_v14  ;;  %v4258_v54 = vand.u32 4294901760, %v3216_v13  ;;  %vm85_vm1 = vcmp.lt.s32.totalorder %v3173_v51, 127 }
  0x57   :  { %2386 = vmatpush3.bf16.msra.mxu1 %v2385_v58  ;;  %v3213_v36 = vpack.c.bf16 %v4347_v42, %v4346_v31  ;;  %v378_v15 = vand.u32 4294901760, %v377_v6  ;;  %v3219_v58 = vsub.f32 %v3171_v45, %v264_v4  ;;  %v2387_v59 = vpack.c.bf16 %v490_v16, %v483_v57 }
  0x58   :  { %v371_v46 = vand.u32 4294901760, %v370_v17  ;;  %v4349_v17 = vand.u32 4294901760, %v3030_v61  ;;  %v3231_v42 = vsub.f32 %v3186_v55, %v216_v63  ;;  %v4352_v55 = vand.u32 4294901760, %v3085_v38 }
  0x59   :  { %4348 = vst [vmem:[#allocation22_spill] sm:$0xff] %v3213_v36  ;;  %2348 = vmatprep.subr.bf16.mxu0 %v3213_v36  ;;  %v4257_v45 = vand.u32 4294901760, %v3219_v58  ;;  %2388 = vmatprep.subr.bf16.mxu1 %v2387_v59  ;;  %v4353_v57 = vand.u32 4294901760, %v3087_v32 }
  0x5a   :  { %v3225_v43 = vpack.c.bf16 %v4350_v10, %v4349_v17  ;;  %v2389_v53 = vpack.c.bf16 %v378_v15, %v371_v46  ;;  %v4260_v10 = vand.u32 4294901760, %v3228_v52  ;;  %v4259_v40 = vand.u32 4294901760, %v3231_v42 }
  0x5b   :  { %v3244_v6 = vpack.c.bf16 %v4353_v57, %v4352_v55  ;;  %v496_v15 = vsub.f32 %v3216_v13, %v4258_v54  ;;  %v503_v16 = vsub.f32 %v3219_v58, %v4257_v45  ;;  %v4355_v57 = vand.u32 4294901760, %v3091_v44 }
  0x5c   :  { %4351 = vst [vmem:[#allocation23_spill] sm:$0xff] %v3225_v43  ;;  %2350 = vmatpush3.bf16.msra.mxu0 %v3225_v43  ;;  %2390 = vmatpush3.bf16.msra.mxu1 %v2389_v53  ;;  %v4356_v45 = vand.u32 4294901760, %v3093_v50 }
  0x5d   :  { %4354 = vst [vmem:[#allocation24_spill] sm:$0xff] %v3244_v6  ;;  %2352 = vmatprep.subr.bf16.mxu0 %v3244_v6  ;;  %v497_v53 = vand.u32 4294901760, %v496_v15  ;;  %v504_v55 = vand.u32 4294901760, %v503_v16  ;;  %v4358_v15 = vand.u32 4294901760, %v3117_v62  ;;  %v4359_v16 = vand.u32 4294901760, %v3119_v7 }
  0x5e   :  { %v3265_v54 = vpack.c.bf16 %v4356_v45, %v4355_v57  ;;  %v3291_v7 = vpack.c.bf16 %v264_v4, %v261_v34  ;;  %v3375_v4 = vld [vmem:[#allocation5 + $0x168] sm:$0xff] }
  0x5f   :  { %v3278_v44 = vpack.c.bf16 %v4359_v16, %v4358_v15 }
  0x60   :  { %4357 = vst [vmem:[#allocation25_spill] sm:$0xff] %v3265_v54  ;;  %2354 = vmatpush3.bf16.msra.mxu0 %v3265_v54  ;;  %4365 = vst [vmem:[#allocation29_spill] sm:$0xff] %v3291_v7 }
  0x61   :  { %4360 = vst [vmem:[#allocation26_spill] sm:$0xff] %v3278_v44  ;;  %2356 = vmatprep.subr.bf16.mxu0 %v3278_v44 }
  0x99   :  { %v51_v27 = vpop.permute.xlu1 %50  ;;  %v47_v11 = vpop.permute.xlu0 %46 }
  0x9d   :  { %v53_v61 = vpop.permute.xlu1 %52  ;;  %v49_v12 = vpop.permute.xlu0 %48 }
  0x9e   :  { %v57_v46 = vsel %vm56_vm0, %v51_v27, %v53_v61  ;;  %v60_v31 = vsel %vm56_vm0, %v53_v61, %v47_v11  ;;  %v58_v38 = vsel %vm56_vm0, %v49_v12, %v51_v27  ;;  %v59_v32 = vsel %vm56_vm0, %v47_v11, %v49_v12 }
  0x9f   :  { %v66_v59 = vcombine.low %v57_v46, %v60_v31  ;;  %v65_v17 = vcombine.low %v59_v32, %v58_v38  ;;  %v384_v61 = vsub.f32 %v3228_v52, %v4260_v10  ;;  %v391_v27 = vsub.f32 %v3231_v42, %v4259_v40  ;;  %v3357_v40 = vld [vmem:[#allocation5 + $0x150] sm:$0xff] }
  0xa0   :  { %v2391_v12 = vpack.c.bf16 %v504_v55, %v497_v53  ;;  %v4361_v46 = vand.u32 4294901760, %v3125_v26  ;;  %v4362_v31 = vand.u32 4294901760, %v3127_v21  ;;  %v3298_v21 = vpack.c.bf16 %v216_v63, %v213_v14  ;;  %v3368_v63 = vld [vmem:[#allocation5 + $0x1e8] sm:$0xff]  ;;  %v4380_v14 = vld [vmem:[#allocation17_spill] sm:$0xff] }
  0xa1   :  { %v69_v11 = vmax.f32 %v2851_v1, %v65_v17  ;;  %v385_v50 = vand.u32 4294901760, %v384_v61  ;;  %v392_v45 = vand.u32 4294901760, %v391_v27  ;;  %v3288_v32 = vmax.f32 %v2849_v0, %v66_v59  ;;  %v3381_v17 = vld [vmem:[#allocation5 + $0x1f8] sm:$0xff] }
  0xa2   :  { %v3285_v38 = vpack.c.bf16 %v4362_v31, %v4361_v46  ;;  %2392 = vmatprep.subr.bf16.mxu1 %v2391_v12  ;;  %v2395_v0 = vpack.c.bf16 %v2874_v19, %v2872_v18  ;;  %v3396_v46 = vld [vmem:[#allocation5 + $0x170] sm:$0xff] }
  0xa3   :  { %77 = vrot.lane.b32.xlu0 %v69_v11, %s2801_s1  ;;  %v73_v1 = vcombine.high %v69_v11, %v69_v11  ;;  %4364 = vst [vmem:[#allocation28_spill] sm:$0xff] %v3288_v32  ;;  %v2393_v62 = vpack.c.bf16 %v392_v45, %v385_v50  ;;  %v74_v26 = vcombine.high %v3288_v32, %v3288_v32 }
  0xa4   :  { %4363 = vst [vmem:[#allocation27_spill] sm:$0xff] %v3285_v38  ;;  %2358 = vmatpush3.bf16.msra.mxu0 %v3285_v38 }
  0xa5   :  { %79 = vrot.lane.b32.xlu1 %v73_v1, %s2801_s1  ;;  %2394 = vmatpush3.bf16.msra.mxu1 %v2393_v62 }
  0xa6   :  { %2428 = vmatprep.subr.bf16.mxu1 %v2937_v56  ;;  %2360 = vmatprep.subr.bf16.mxu0 %v3291_v7 }
  0xa7   :  { %81 = vrot.lane.b32.xlu0 %v3288_v32, %s2801_s1 }
  0xa8   :  { %2362 = vmatpush3.bf16.msra.mxu0 %v3298_v21 }
  0xa9   :  { %83 = vrot.lane.b32.xlu1 %v74_v26, %s2801_s1  ;;  %2396 = vmatprep.subr.bf16.mxu0 %v2395_v0 }
 0x115   :  { %v78_v53 = vpop.permute.xlu0 %77 }
 0x117   :  { %v80_v55 = vpop.permute.xlu1 %79 }
 0x118   :  { %v88_v61 = vsel %vm85_vm1, %v78_v53, %v80_v55 }
 0x119   :  { %v82_v57 = vpop.permute.xlu0 %81 }
 0x11a   :  { %v87_v27 = vsel %vm85_vm1, %v80_v55, %v82_v57 }
 0x11b   :  { %v94_v12 = vcombine.low %v88_v61, %v87_v27  ;;  %v84_v15 = vpop.permute.xlu1 %83  ;;  %v2397_v61 = vpack.c.bf16 %v2880_v22, %v2877_v20 }
 0x11c   :  { %v3317_v16 = vsel %vm85_vm1, %v82_v57, %v84_v15  ;;  %v3319_v50 = vsel %vm85_vm1, %v84_v15, %v78_v53  ;;  %v2401_v15 = vpack.c.bf16 %v2901_v33, %v2895_v29 }
 0x11d   :  { %4366 = vst [vmem:[#allocation30_spill] sm:$0xff] %v3317_v16  ;;  %4367 = vst [vmem:[#allocation31_spill] sm:$0xff] %v3319_v50  ;;  %v98_v45 = vmax.f32 %v69_v11, %v94_v12  ;;  %v2399_v12 = vpack.c.bf16 %v2886_v24, %v2883_v23  ;;  %v3398_v16 = vld [vmem:[#allocation5 + $0x178] sm:$0xff] }
 0x11e   :  { %4391 = vst [vmem:[#allocation33_spill] sm:$0xff] %v3398_v16 }
 0x11f   :  { %v166_v31 = vcombine.high %v98_v45, %v98_v45  ;;  %v3323_v1 = vand.u32 4294901760, %v98_v45 }
 0x121   :  { %4368 = vst [vmem:[#allocation32_spill] sm:$0xff] %v3323_v1  ;;  %v3325_v62 = vand.u32 4294901760, %v166_v31  ;;  %v3328_v51 = vsub.f32 %v98_v45, %v3323_v1  ;;  %v2403_v45 = vpack.c.bf16 %v2956_v8, %v2947_v2 }
 0x123   :  { %507 = vmatprep.mubr.f32.mxu1 %v3325_v62  ;;  %v267_v26 = vsub.f32 %v166_v31, %v3325_v62  ;;  %v4261_v0 = vand.u32 4294901760, %v3328_v51  ;;  %v4369_v31 = vld [vmem:[#allocation21_spill] sm:$0xff] }
 0x124   :  { %509 = vmatmul.mubr.f32.vlgmr.msra.gmra.mrb[0].mxu1 %v3323_v1  ;;  %v3379_v1 = vld [vmem:[#allocation5 + $0x1f0] sm:$0xff] }
 0x125   :  { %2430 = vmatpush3.bf16.msra.mxu1 %v2949_v3  ;;  %v268_v11 = vand.u32 4294901760, %v267_v26  ;;  %v275_v53 = vsub.f32 %v3328_v51, %v4261_v0  ;;  %v4381_v0 = vld [vmem:[#allocation18_spill] sm:$0xff]  ;;  %4384 = vst [vmem:[#allocation17_spill] sm:$0xff] %v3379_v1 }
 0x126   :  { %2432 = vmatprep.subr.bf16.mxu1 %v2958_v9  ;;  %v2411_v59 = vpack.c.bf16 %v4381_v0, %v4380_v14  ;;  %4385 = vst [vmem:[#allocation18_spill] sm:$0xff] %v3381_v17 }
 0x127   :  { %751 = vmatprep.mubr.f32.mxu1 %v268_v11  ;;  %v269_v55 = vsub.f32 %v267_v26, %v268_v11  ;;  %v276_v27 = vand.u32 4294901760, %v275_v53  ;;  %v4370_v11 = vld [vmem:[#allocation11_spill] sm:$0xff]  ;;  %v4371_v53 = vld [vmem:[#allocation12_spill] sm:$0xff] }
 0x128   :  { %4374 = vst [vmem:[#allocation11_spill] sm:$0xff] %v3357_v40 }
 0x129   :  { %2434 = vmatpush3.bf16.msra.mxu1 %v2981_v35  ;;  %v270_v57 = vand.u32 4294901760, %v269_v55  ;;  %v2405_v55 = vpack.c.bf16 %v4371_v53, %v4370_v11 }
 0x12a   :  { %2436 = vmatprep.subr.bf16.mxu1 %v3028_v60 }
 0x12b   :  { %271 = vmatprep.mubr.f32.mxu0 %v270_v57  ;;  %v4372_v57 = vld [vmem:[#allocation13_spill] sm:$0xff] }
 0x12c   :  { %277 = vmatmul.mubr.f32.vlgmr.msra.gmra.mrb[0].mxu0 %v276_v27 }
 0x12d   :  { %2398 = vmatpush3.bf16.msra.mxu0 %v2397_v61  ;;  %2438 = vmatpush3.bf16.msra.mxu1 %v3044_v48  ;;  %v4373_v61 = vld [vmem:[#allocation14_spill] sm:$0xff] }
 0x12e   :  { %644 = vmatprep.mubr.f32.mxu0 %v267_v26  ;;  %2400 = vmatprep.subr.bf16.mxu0 %v2399_v12  ;;  %v2407_v27 = vpack.c.bf16 %v4373_v61, %v4372_v57  ;;  %v3359_v26 = vld [vmem:[#allocation5 + $0x158] sm:$0xff]  ;;  %v4376_v12 = vld [vmem:[#allocation15_spill] sm:$0xff]  ;;  %4379 = vst [vmem:[#allocation14_spill] sm:$0xff] %v3368_v63 }
 0x12f   :  { %2440 = vmatprep.subr.bf16.mxu1 %v3179_v49  ;;  %4375 = vst [vmem:[#allocation12_spill] sm:$0xff] %v3359_v26  ;;  %v4389_v50 = vand.u32 4294901760, %v3359_v26 }
 0x131   :  { %2402 = vmatpush3.bf16.msra.mxu0 %v2401_v15  ;;  %2442 = vmatpush3.bf16.msra.mxu1 %v4369_v31  ;;  %v4377_v15 = vld [vmem:[#allocation16_spill] sm:$0xff]  ;;  %v3394_v34 = vsub.f32 %v3359_v26, %v4389_v50  ;;  %v4394_v26 = vand.u32 4294901760, %v3368_v63 }
 0x132   :  { %2404 = vmatprep.subr.bf16.mxu0 %v2403_v45  ;;  %2444 = vmatprep.subr.bf16.mxu1 %v3213_v36  ;;  %v2409_v10 = vpack.c.bf16 %v4377_v15, %v4376_v12  ;;  %v3366_v45 = vld [vmem:[#allocation5 + $0x1e0] sm:$0xff]  ;;  %4383 = vst [vmem:[#allocation16_spill] sm:$0xff] %v3375_v4  ;;  %v4388_v36 = vand.u32 4294901760, %v3357_v40  ;;  %v3436_v31 = vld [vmem:[#allocation5 + $0x188] sm:$0xff] }
 0x133   :  { %4378 = vst [vmem:[#allocation13_spill] sm:$0xff] %v3366_v45 }
 0x134   :  { %v3389_v32 = vsub.f32 %v3357_v40, %v4388_v36  ;;  %v4392_v40 = vand.u32 4294901760, %v3366_v45  ;;  %v4399_v36 = vand.u32 4294901760, %v3379_v1 }
 0x135   :  { %2406 = vmatpush3.bf16.msra.mxu0 %v2405_v55  ;;  %2446 = vmatpush3.bf16.msra.mxu1 %v3225_v43  ;;  %v3373_v55 = vld [vmem:[#allocation5 + $0x160] sm:$0xff] }
 0x136   :  { %2408 = vmatprep.subr.bf16.mxu0 %v2407_v27  ;;  %2448 = vmatprep.subr.bf16.mxu1 %v3244_v6  ;;  %4382 = vst [vmem:[#allocation15_spill] sm:$0xff] %v3373_v55  ;;  %v4386_v27 = vld [vmem:[#allocation19_spill] sm:$0xff]  ;;  %v4387_v6 = vld [vmem:[#allocation20_spill] sm:$0xff]  ;;  %v3408_v50 = vsub.f32 %v3366_v45, %v4392_v40  ;;  %v4395_v40 = vpack.c.bf16 %v3105_v41, %v3100_v37 }
 0x137   :  { %v2413_v43 = vpack.c.bf16 %v4387_v6, %v4386_v27  ;;  %4390 = vst [vmem:[#allocation19_spill] sm:$0xff] %v3396_v46  ;;  %v3413_v6 = vsub.f32 %v3368_v63, %v4394_v26  ;;  %v4396_v26 = vand.u32 4294901760, %v3373_v55  ;;  %v4400_v63 = vand.u32 4294901760, %v3381_v17 }
 0x138   :  { %4393 = vst [vmem:[#allocation34_spill] sm:$0xff] %v3408_v50 }
 0x139   :  { %2410 = vmatpush3.bf16.msra.mxu0 %v2409_v10  ;;  %2450 = vmatpush3.bf16.msra.mxu1 %v3265_v54  ;;  %v3424_v54 = vld [vmem:[#allocation5 + $0x180] sm:$0xff]  ;;  %v3446_v45 = vsub.f32 %v3381_v17, %v4400_v63  ;;  %v4405_v63 = vand.u32 4294901760, %v3398_v16 }
 0x13a   :  { %2412 = vmatprep.subr.bf16.mxu0 %v2411_v59  ;;  %2452 = vmatprep.subr.bf16.mxu1 %v3278_v44  ;;  %v3429_v59 = vsub.f32 %v3373_v55, %v4396_v26  ;;  %v4401_v26 = vand.u32 4294901760, %v3389_v32  ;;  %v4402_v55 = vand.u32 4294901760, %v3394_v34 }
 0x13b   :  { %v3468_v17 = vsub.f32 %v3398_v16, %v4405_v63  ;;  %v3512_v63 = vld [vmem:[#allocation5 + $0x198] sm:$0xff] }
 0x13d   :  { %2414 = vmatpush3.bf16.msra.mxu0 %v2413_v43  ;;  %2454 = vmatpush3.bf16.msra.mxu1 %v3285_v38  ;;  %v4397_v43 = vand.u32 4294901760, %v3375_v4  ;;  %4406 = vst [vmem:[#allocation37_spill] sm:$0xff] %v3468_v17  ;;  %v3494_v38 = vld [vmem:[#allocation5 + $0x190] sm:$0xff] }
 0x13e   :  { %2416 = vmatprep.subr.bf16.mxu0 %v4395_v40  ;;  %2456 = vmatprep.subr.bf16.mxu1 %v3291_v7  ;;  %v3441_v40 = vsub.f32 %v3379_v1, %v4399_v36  ;;  %v3452_v7 = vpack.c.bf16 %v4402_v55, %v4401_v26  ;;  %v4404_v1 = vand.u32 4294901760, %v3396_v46  ;;  %v4407_v55 = vpack.c.bf16 %v3115_v5, %v3110_v39 }
 0x13f   :  { %v3434_v10 = vsub.f32 %v3375_v4, %v4397_v43  ;;  %v3454_v43 = vld [vmem:[#allocation5 + $0x100] sm:$0xff]  ;;  %v3456_v4 = vld [vmem:[#allocation5 + $0x108] sm:$0xff]  ;;  %v4408_v36 = vpack.c.bf16 %v3147_v25, %v3142_v47 }
 0x140   :  { %4403 = vst [vmem:[#allocation36_spill] sm:$0xff] %v3452_v7  ;;  %v3463_v44 = vsub.f32 %v3396_v46, %v4404_v1  ;;  %v4409_v7 = vand.u32 4294901760, %v3408_v50  ;;  %v4412_v1 = vand.u32 4294901760, %v3328_v51  ;;  %v4416_v46 = vpack.c.bf16 %v3163_v28, %v3158_v30 }
 0x141   :  { %4398 = vst [vmem:[#allocation35_spill] sm:$0xff] %v3434_v10  ;;  %2418 = vmatpush3.bf16.msra.mxu0 %v4407_v55  ;;  %2458 = vmatpush3.bf16.msra.mxu1 %v3298_v21  ;;  %v4410_v55 = vand.u32 4294901760, %v3413_v6  ;;  %v4419_v50 = vand.u32 4294901760, %v3441_v40 }
 0x142   :  { %2420 = vmatprep.subr.bf16.mxu0 %v4408_v36  ;;  %2492 = vmatprep.subr.bf16.mxu1 %v2937_v56  ;;  %v4418_v56 = vand.u32 4294901760, %v2874_v19  ;;  %v4425_v19 = vand.u32 4294901760, %v3436_v31 }
 0x143   :  { %v3486_v16 = vpack.c.bf16 %v4410_v55, %v4409_v7  ;;  %v4413_v7 = vand.u32 4294901760, %v3429_v59  ;;  %v4414_v55 = vand.u32 4294901760, %v3434_v10 }
 0x144   :  { %755 = vmatmul.mubr.f32.vlgmr.msra.gmra.mrb[2].mxu1 %v4412_v1  ;;  %v4417_v1 = vand.u32 4294901760, %v2872_v18 }
 0x145   :  { %4411 = vst [vmem:[#allocation38_spill] sm:$0xff] %v3486_v16  ;;  %v3502_v26 = vpack.c.bf16 %v4414_v55, %v4413_v7  ;;  %2422 = vmatpush3.bf16.msra.mxu0 %v4416_v46  ;;  %2494 = vmatpush3.bf16.msra.mxu1 %v2949_v3  ;;  %v4420_v16 = vand.u32 4294901760, %v3446_v45  ;;  %v4422_v46 = vpack.c.bf16 %v3219_v58, %v3216_v13  ;;  %v4423_v3 = vand.u32 4294901760, %v3424_v54 }
 0x146   :  { %v2459_v36 = vpack.c.bf16 %v4418_v56, %v4417_v1  ;;  %1025 = vmatprep.mubr.f32.mxu1 %v3325_v62  ;;  %v3532_v56 = vsub.f32 %v3436_v31, %v4425_v19  ;;  %v4427_v7 = vand.u32 4294901760, %v3463_v44  ;;  %2496 = vmatprep.subr.bf16.mxu1 %v2958_v9  ;;  %v4430_v55 = vand.u32 4294901760, %v3454_v43 }
 0x147   :  { %4415 = vst [vmem:[#allocation39_spill] sm:$0xff] %v3502_v26  ;;  %v3518_v10 = vpack.c.bf16 %v4420_v16, %v4419_v50  ;;  %2424 = vmatprep.subr.bf16.mxu0 %v4422_v46  ;;  %v3527_v18 = vsub.f32 %v3424_v54, %v4423_v3  ;;  %v4428_v16 = vand.u32 4294901760, %v3468_v17  ;;  %v4432_v46 = vand.u32 4294901760, %v3456_v4 }
 0x148   :  { %4426 = vst [vmem:[#allocation42_spill] sm:$0xff] %v3532_v56  ;;  %v3544_v1 = vsub.f32 %v3454_v43, %v4430_v55  ;;  %v4435_v9 = vand.u32 4294901760, %v2877_v20  ;;  %v4438_v19 = vand.u32 4294901760, %v2886_v24  ;;  %v4290_v17 = vand.u32 4294901760, %v3532_v56 }
 0x149   :  { %4421 = vst [vmem:[#allocation40_spill] sm:$0xff] %v3518_v10  ;;  %4424 = vst [vmem:[#allocation41_spill] sm:$0xff] %v3527_v18  ;;  %v3538_v50 = vpack.c.bf16 %v4428_v16, %v4427_v7  ;;  %v3549_v3 = vsub.f32 %v3456_v4, %v4432_v46  ;;  %v3552_v10 = vld [vmem:[#allocation5 + $0x110] sm:$0xff]  ;;  %v4434_v7 = vpack.c.bf16 %v3231_v42, %v3228_v52  ;;  %2498 = vmatpush3.bf16.msra.mxu1 %v2981_v35  ;;  %v3595_v35 = vld [vmem:[#allocation5 + $0x1a0] sm:$0xff] }
 0x14a   :  { %4431 = vst [vmem:[#allocation44_spill] sm:$0xff] %v3544_v1  ;;  %v4436_v16 = vand.u32 4294901760, %v2880_v22  ;;  %2500 = vmatprep.subr.bf16.mxu1 %v3028_v60  ;;  %v4437_v46 = vand.u32 4294901760, %v2883_v23  ;;  %v4291_v26 = vand.u32 4294901760, %v3527_v18  ;;  %v4439_v22 = vand.u32 4294901760, %v3494_v38  ;;  %v3578_v60 = vld [vmem:[#allocation5 + $0x118] sm:$0xff] }
 0x14b   :  { %4429 = vst [vmem:[#allocation43_spill] sm:$0xff] %v3538_v50  ;;  %4433 = vst [vmem:[#allocation45_spill] sm:$0xff] %v3549_v3  ;;  %2426 = vmatpush3.bf16.msra.mxu0 %v4434_v7  ;;  %v4292_v7 = vand.u32 4294901760, %v3552_v10  ;;  %v4441_v23 = vand.u32 4294901760, %v3512_v63 }
 0x14c   :  { %v2461_v55 = vpack.c.bf16 %v4436_v16, %v4435_v9  ;;  %2460 = vmatprep.subr.bf16.mxu0 %v2459_v36  ;;  %v2463_v50 = vpack.c.bf16 %v4438_v19, %v4437_v46  ;;  %v3576_v36 = vsub.f32 %v3494_v38, %v4439_v22  ;;  %v4443_v19 = vand.u32 4294901760, %v2895_v29 }
 0x14d   :  { %v3584_v24 = vsub.f32 %v3512_v63, %v4441_v23  ;;  %v4444_v9 = vand.u32 4294901760, %v2901_v33  ;;  %v4445_v46 = vand.u32 4294901760, %v2947_v2  ;;  %v4446_v22 = vand.u32 4294901760, %v2956_v8  ;;  %2502 = vmatpush3.bf16.msra.mxu1 %v3044_v48 }
 0x14e   :  { %4440 = vst [vmem:[#allocation46_spill] sm:$0xff] %v3576_v36  ;;  %647 = vmatmul.mubr.f32.vlgmr.msra.gmra.mrb[2].mxu0 %v3328_v51  ;;  %v3597_v51 = vld [vmem:[#allocation5 + $0x1a8] sm:$0xff]  ;;  %v1267_v29 = vsub.f32 %v3532_v56, %v4290_v17  ;;  %v4293_v33 = vand.u32 4294901760, %v3578_v60  ;;  %v3610_v2 = vsub.f32 %v3552_v10, %v4292_v7  ;;  %2504 = vmatprep.subr.bf16.mxu1 %v3179_v49  ;;  %v4448_v8 = vand.u32 4294901760, %v4370_v11 }
 0x14f   :  { %4442 = vst [vmem:[#allocation47_spill] sm:$0xff] %v3584_v24  ;;  %2462 = vmatpush3.bf16.msra.mxu0 %v2461_v55  ;;  %921 = vmatprep.mubr.f32.mxu0 %v3325_v62  ;;  %v2465_v16 = vpack.c.bf16 %v4444_v9, %v4443_v19  ;;  %v2467_v20 = vpack.c.bf16 %v4446_v22, %v4445_v46  ;;  %v4449_v48 = vand.u32 4294901760, %v4371_v53  ;;  %v4450_v55 = vand.u32 4294901760, %v3544_v1 }
 0x150   :  { %2464 = vmatprep.subr.bf16.mxu0 %v2463_v50  ;;  %v1260_v62 = vsub.f32 %v3527_v18, %v4291_v26  ;;  %4447 = vst [vmem:[#allocation48_spill] sm:$0xff] %v3610_v2  ;;  %v4451_v19 = vand.u32 4294901760, %v3549_v3  ;;  %v4294_v46 = vand.u32 4294901760, %v3576_v36  ;;  %v4452_v22 = vand.u32 4294901760, %v4372_v57 }
 0x151   :  { %v2469_v50 = vpack.c.bf16 %v4449_v48, %v4448_v8  ;;  %v1148_v23 = vsub.f32 %v3544_v1, %v4450_v55  ;;  %v4453_v17 = vand.u32 4294901760, %v4373_v61  ;;  %v4454_v48 = vand.u32 4294901760, %v4376_v12  ;;  %v3651_v12 = vld [vmem:[#allocation5 + $0x120] sm:$0xff] }
 0x152   :  { %v1155_v9 = vsub.f32 %v3549_v3, %v4451_v19  ;;  %v4455_v55 = vand.u32 4294901760, %v4377_v15  ;;  %v4456_v19 = vand.u32 4294901760, %v4380_v14  ;;  %v4457_v7 = vand.u32 4294901760, %v4381_v0  ;;  %v4463_v15 = vld [vmem:[#allocation21_spill] sm:$0xff] }
 0x153   :  { %v2471_v49 = vpack.c.bf16 %v4453_v17, %v4452_v22  ;;  %2466 = vmatpush3.bf16.msra.mxu0 %v2465_v16  ;;  %v4458_v61 = vand.u32 4294901760, %v4386_v27  ;;  %v4459_v17 = vld [vmem:[#allocation20_spill] sm:$0xff]  ;;  %v4461_v53 = vand.u32 4294901760, %v3100_v37  ;;  %v4462_v16 = vand.u32 4294901760, %v3105_v41  ;;  %2506 = vmatpush3.bf16.msra.mxu1 %v4463_v15  ;;  %v4465_v41 = vld [vmem:[#allocation30_spill] sm:$0xff] }
 0x154   :  { %v2473_v26 = vpack.c.bf16 %v4455_v55, %v4454_v48  ;;  %v2475_v57 = vpack.c.bf16 %v4457_v7, %v4456_v19  ;;  %v4460_v22 = vand.u32 4294901760, %v4459_v17  ;;  %2468 = vmatprep.subr.bf16.mxu0 %v2467_v20  ;;  %v1261_v14 = vand.u32 4294901760, %v1260_v62  ;;  %v3660_v48 = vld [vmem:[#allocation5 + $0x128] sm:$0xff]  ;;  %v3662_v37 = vld [vmem:[#allocation5 + $0x1b0] sm:$0xff]  ;;  %v4470_v20 = vld [vmem:[#allocation22_spill] sm:$0xff] }
 0x155   :  { %v3649_v8 = vpack.c.bf16 %v4462_v16, %v4461_v53  ;;  %v1268_v0 = vand.u32 4294901760, %v1267_v29  ;;  %v3658_v27 = vsub.f32 %v3578_v60, %v4293_v33  ;;  %v4466_v53 = vld [vmem:[#allocation31_spill] sm:$0xff]  ;;  %v4468_v19 = vld [vmem:[#allocation28_spill] sm:$0xff]  ;;  %2508 = vmatprep.subr.bf16.mxu1 %v4470_v20  ;;  %v1149_v62 = vand.u32 4294901760, %v1148_v23 }
 0x156   :  { %v3643_v11 = vpack.c.bf16 %v4460_v22, %v4458_v61  ;;  %v4467_v55 = vcombine.low %v4465_v41, %v4466_v53  ;;  %v1156_v29 = vand.u32 4294901760, %v1155_v9  ;;  %v1274_v17 = vsub.f32 %v3576_v36, %v4294_v46  ;;  %v3688_v9 = vld [vmem:[#allocation5 + $0x1b8] sm:$0xff]  ;;  %v4480_v23 = vld [vmem:[#allocation23_spill] sm:$0xff] }
 0x157   :  { %4464 = vst [vmem:[#allocation20_spill] sm:$0xff] %v3658_v27  ;;  %v4471_v22 = vand.u32 4294901760, %v3584_v24  ;;  %v4472_v15 = vand.u32 4294901760, %v3595_v35  ;;  %v4474_v41 = vand.u32 4294901760, %v3597_v51  ;;  %2470 = vmatpush3.bf16.msra.mxu0 %v2469_v50  ;;  %v4296_v7 = vand.u32 4294901760, %v3662_v37  ;;  %2510 = vmatpush3.bf16.msra.mxu1 %v4480_v23  ;;  %v4484_v23 = vld [vmem:[#allocation24_spill] sm:$0xff] }
 0x158   :  { %v3668_v61 = vmax.f32 %v4468_v19, %v4467_v55  ;;  %v4476_v55 = vand.u32 4294901760, %v3110_v39  ;;  %v4477_v19 = vand.u32 4294901760, %v3115_v5  ;;  %2472 = vmatprep.subr.bf16.mxu0 %v2471_v49  ;;  %v3705_v50 = vpack.c.bf16 %v1268_v0, %v1261_v14  ;;  %2512 = vmatprep.subr.bf16.mxu1 %v4484_v23  ;;  %v3727_v0 = vld [vmem:[#allocation5 + $0x138] sm:$0xff]  ;;  %v3736_v23 = vld [vmem:[#allocation5 + $0x1c0] sm:$0xff] }
 0x159   :  { %v1281_v16 = vsub.f32 %v3584_v24, %v4471_v22  ;;  %v3680_v33 = vsub.f32 %v3595_v35, %v4472_v15  ;;  %v3685_v53 = vsub.f32 %v3597_v51, %v4474_v41  ;;  %v4478_v22 = vand.u32 4294901760, %v3142_v47 }
 0x15a   :  { %4469 = vst [vmem:[#allocation21_spill] sm:$0xff] %v3668_v61  ;;  %v3694_v20 = vpack.c.bf16 %v4477_v19, %v4476_v55  ;;  %v4479_v15 = vand.u32 4294901760, %v3147_v25  ;;  %v4295_v41 = vand.u32 4294901760, %v3660_v48  ;;  %v4481_v39 = vand.u32 4294901760, %v3158_v30 }
 0x15b   :  { %4473 = vst [vmem:[#allocation30_spill] sm:$0xff] %v3680_v33  ;;  %4475 = vst [vmem:[#allocation31_spill] sm:$0xff] %v3685_v53  ;;  %v4482_v5 = vand.u32 4294901760, %v3163_v28  ;;  %v4483_v47 = vand.u32 4294901760, %v3610_v2  ;;  %v3722_v49 = vpack.c.bf16 %v1156_v29, %v1149_v62  ;;  %v1275_v14 = vand.u32 4294901760, %v1274_v17  ;;  %v3725_v28 = vld [vmem:[#allocation5 + $0x130] sm:$0xff]  ;;  %2474 = vmatpush3.bf16.msra.mxu0 %v2473_v26 }
 0x15c   :  { %v3700_v46 = vpack.c.bf16 %v4479_v15, %v4478_v22  ;;  %v167_v22 = vcombine.high %v3668_v61, %v3668_v61  ;;  %v1282_v15 = vand.u32 4294901760, %v1281_v16  ;;  %v3738_v62 = vld [vmem:[#allocation5 + $0x1c8] sm:$0xff]  ;;  %v4487_v29 = vand.u32 4294901760, %v3216_v13  ;;  %v4493_v13 = vld [vmem:[#allocation25_spill] sm:$0xff]  ;;  %2476 = vmatprep.subr.bf16.mxu0 %v2475_v57 }
 0x15d   :  { %v3711_v55 = vpack.c.bf16 %v4482_v5, %v4481_v39  ;;  %v3716_v25 = vsub.f32 %v3610_v2, %v4483_v47  ;;  %v4485_v47 = vand.u32 4294901760, %v3651_v12  ;;  %v4488_v17 = vand.u32 4294901760, %v3219_v58  ;;  %2514 = vmatpush3.bf16.msra.mxu1 %v4493_v13  ;;  %v4503_v13 = vld [vmem:[#allocation29_spill] sm:$0xff] }
 0x15e   :  { %v4489_v16 = vand.u32 4294901760, %v3228_v52  ;;  %v4490_v5 = vand.u32 4294901760, %v3231_v42  ;;  %v3760_v26 = vsub.f32 %v3662_v37, %v4296_v7  ;;  %v4494_v52 = vand.u32 4294901760, %v3658_v27 }
 0x15f   :  { %v3734_v19 = vsub.f32 %v3651_v12, %v4485_v47  ;;  %v3744_v30 = vpack.c.bf16 %v4488_v17, %v4487_v29  ;;  %v3755_v47 = vsub.f32 %v3660_v48, %v4295_v41  ;;  %v1163_v58 = vand.u32 4294901760, %v3716_v25  ;;  %v3769_v17 = vld [vmem:[#allocation5 + $0x140] sm:$0xff]  ;;  %v3785_v29 = vld [vmem:[#allocation5 + $0x1d8] sm:$0xff]  ;;  %2478 = vmatpush3.bf16.msra.mxu0 %v3643_v11 }
 0x160   :  { %v3750_v39 = vpack.c.bf16 %v4490_v5, %v4489_v16  ;;  %4492 = vst [vmem:[#allocation23_spill] sm:$0xff] %v3760_v26  ;;  %v1169_v42 = vsub.f32 %v3658_v27, %v4494_v52  ;;  %v3771_v16 = vld [vmem:[#allocation5 + $0x148] sm:$0xff]  ;;  %v4495_v41 = vld [vmem:[#allocation26_spill] sm:$0xff]  ;;  %v3774_v7 = vand.u32 4294901760, %v167_v22  ;;  %v4496_v57 = vand.u32 4294901760, %v3688_v9  ;;  %v3783_v5 = vld [vmem:[#allocation5 + $0x1d0] sm:$0xff]  ;;  %2480 = vmatprep.subr.bf16.mxu0 %v3649_v8 }
 0x161   :  { %4486 = vst [vmem:[#allocation28_spill] sm:$0xff] %v3734_v19  ;;  %4491 = vst [vmem:[#allocation22_spill] sm:$0xff] %v3755_v47  ;;  %2516 = vmatprep.subr.bf16.mxu1 %v4495_v41  ;;  %v2559_v27 = vpack.c.bf16 %v1282_v15, %v1275_v14  ;;  %v4498_v2 = vand.u32 4294901760, %v3680_v33  ;;  %v4499_v24 = vand.u32 4294901760, %v3685_v53  ;;  %v4500_v15 = vld [vmem:[#allocation27_spill] sm:$0xff]  ;;  %v4504_v14 = vand.u32 4294901760, %v3736_v23 }
 0x162   :  { %v3779_v25 = vsub.f32 %v3688_v9, %v4496_v57  ;;  %4497 = vst [vmem:[#allocation24_spill] sm:$0xff] %v3785_v29  ;;  %2518 = vmatpush3.bf16.msra.mxu1 %v4500_v15  ;;  %v4502_v57 = vand.u32 4294901760, %v3727_v0  ;;  %v3815_v15 = vsub.f32 %v167_v22, %v3774_v7  ;;  %v1170_v52 = vand.u32 4294901760, %v1169_v42 }
 0x163   :  { %v1288_v41 = vsub.f32 %v3680_v33, %v4498_v2  ;;  %v1295_v36 = vsub.f32 %v3685_v53, %v4499_v24  ;;  %v4501_v2 = vand.u32 4294901760, %v3725_v28  ;;  %2520 = vmatprep.subr.bf16.mxu1 %v4503_v13  ;;  %v4505_v53 = vand.u32 4294901760, %v3738_v62  ;;  %2482 = vmatpush3.bf16.msra.mxu0 %v3694_v20 }
 0x164   :  { %v3809_v11 = vsub.f32 %v3727_v0, %v4502_v57  ;;  %v4506_v13 = vand.u32 4294901760, %v3734_v19  ;;  %v4507_v8 = vand.u32 4294901760, %v3755_v47  ;;  %2484 = vmatprep.subr.bf16.mxu0 %v3700_v46  ;;  %v4513_v46 = vand.u32 4294901760, %v3779_v25 }
 0x165   :  { %v3804_v24 = vsub.f32 %v3725_v28, %v4501_v2  ;;  %v3821_v2 = vsub.f32 %v3736_v23, %v4504_v14  ;;  %v3826_v57 = vsub.f32 %v3738_v62, %v4505_v53  ;;  %v1289_v33 = vand.u32 4294901760, %v1288_v41 }
 0x166   :  { %v1296_v3 = vand.u32 4294901760, %v1295_v36  ;;  %v1176_v22 = vsub.f32 %v3734_v19, %v4506_v13  ;;  %v1183_v1 = vsub.f32 %v3755_v47, %v4507_v8  ;;  %v4508_v14 = vand.u32 4294901760, %v3760_v26  ;;  %2522 = vmatpush3.bf16.msra.mxu1 %v3298_v21 }
 0x167   :  { %v4509_v53 = vand.u32 4294901760, %v3769_v17  ;;  %v4510_v36 = vand.u32 4294901760, %v3771_v16  ;;  %v4511_v13 = vand.u32 4294901760, %v3783_v5  ;;  %2556 = vmatprep.subr.bf16.mxu1 %v3705_v50  ;;  %v1322_v20 = vand.u32 4294901760, %v3826_v57  ;;  %v4516_v50 = vld [vmem:[#allocation32_spill] sm:$0xff]  ;;  %2486 = vmatpush3.bf16.msra.mxu0 %v3711_v55 }
 0x168   :  { %v1302_v56 = vsub.f32 %v3760_v26, %v4508_v14  ;;  %v2561_v47 = vpack.c.bf16 %v1170_v52, %v1163_v58  ;;  %v4515_v19 = vand.u32 4294901760, %v3436_v31  ;;  %v1177_v61 = vand.u32 4294901760, %v1176_v22  ;;  %2488 = vmatprep.subr.bf16.mxu0 %v3744_v30 }
 0x169   :  { %v3841_v42 = vsub.f32 %v3769_v17, %v4509_v53  ;;  %v3846_v41 = vsub.f32 %v3771_v16, %v4510_v36  ;;  %v3855_v14 = vsub.f32 %v3783_v5, %v4511_v13  ;;  %v4512_v53 = vand.u32 4294901760, %v3785_v29  ;;  %1027 = vmatmul.mubr.f32.vlgmr.msra.gmra.mrb[4].mxu1 %v4516_v50 }
 0x16a   :  { %v1309_v36 = vsub.f32 %v3779_v25, %v4513_v46  ;;  %v4514_v13 = vand.u32 4294901760, %v3424_v54  ;;  %v1184_v21 = vand.u32 4294901760, %v1183_v1  ;;  %2558 = vmatpush3.bf16.msra.mxu1 %v3722_v49  ;;  %1369 = vmatprep.mubr.f32.mxu1 %v3774_v7  ;;  %v4517_v54 = vand.u32 4294901760, %v3804_v24 }
 0x16b   :  { %v3860_v26 = vsub.f32 %v3785_v29, %v4512_v53  ;;  %v2563_v53 = vpack.c.bf16 %v1296_v3, %v1289_v33  ;;  %v1303_v29 = vand.u32 4294901760, %v1302_v56  ;;  %v1203_v46 = vand.u32 4294901760, %v3841_v42  ;;  %2560 = vmatprep.subr.bf16.mxu1 %v2559_v27  ;;  %2490 = vmatpush3.bf16.msra.mxu0 %v3750_v39 }
 0x16c   :  { %v3873_v18 = vpack.c.bf16 %v4515_v19, %v4514_v13  ;;  %v1210_v8 = vand.u32 4294901760, %v3846_v41  ;;  %v1190_v31 = vsub.f32 %v3804_v24, %v4517_v54  ;;  %v4518_v3 = vand.u32 4294901760, %v3809_v11 }
 0x16d   :  { %v1329_v55 = vand.u32 4294901760, %v3855_v14  ;;  %v4326_v56 = vand.u32 4294901760, %v3860_v26  ;;  %v4519_v1 = vand.u32 4294901760, %v3815_v15  ;;  %v1310_v49 = vand.u32 4294901760, %v1309_v36 }
 0x16e   :  { %v1197_v33 = vsub.f32 %v3809_v11, %v4518_v3  ;;  %v4520_v58 = vand.u32 4294901760, %v3821_v2  ;;  %v1323_v22 = vsub.f32 %v3826_v57, %v1322_v20  ;;  %v4521_v13 = vand.u32 4294901760, %v3454_v43  ;;  %2562 = vmatpush3.bf16.msra.mxu1 %v2561_v47  ;;  %2524 = vmatprep.subr.bf16.mxu0 %v3873_v18 }
 0x16f   :  { %v1131_v19 = vsub.f32 %v3815_v15, %v4519_v1  ;;  %v4522_v54 = vand.u32 4294901760, %v3456_v4  ;;  %v2565_v27 = vpack.c.bf16 %v1184_v21, %v1177_v61  ;;  %v4523_v30 = vand.u32 4294901760, %v3494_v38  ;;  %2564 = vmatprep.subr.bf16.mxu1 %v2563_v53  ;;  %923 = vmatmul.mubr.f32.vlgmr.msra.gmra.mrb[4].mxu0 %v4516_v50 }
 0x170   :  { %v1316_v52 = vsub.f32 %v3821_v2, %v4520_v58  ;;  %v4524_v36 = vand.u32 4294901760, %v3512_v63  ;;  %v1204_v58 = vsub.f32 %v3841_v42, %v1203_v46  ;;  %v1211_v43 = vsub.f32 %v3846_v41, %v1210_v8 }
 0x171   :  { %v3903_v3 = vpack.c.bf16 %v4522_v54, %v4521_v13  ;;  %v1191_v4 = vand.u32 4294901760, %v1190_v31  ;;  %v1198_v39 = vand.u32 4294901760, %v1197_v33  ;;  %v1330_v38 = vsub.f32 %v3855_v14, %v1329_v55 }
 0x172   :  { %v3910_v1 = vpack.c.bf16 %v4524_v36, %v4523_v30  ;;  %v1337_v63 = vsub.f32 %v3860_v26, %v4326_v56  ;;  %v1132_v61 = vand.u32 4294901760, %v1131_v19  ;;  %v2567_v21 = vpack.c.bf16 %v1310_v49, %v1303_v29  ;;  %2566 = vmatpush3.bf16.msra.mxu1 %v2565_v27 }
 0x173   :  { %v1317_v13 = vand.u32 4294901760, %v1316_v52  ;;  %v1324_v54 = vand.u32 4294901760, %v1323_v22  ;;  %v4525_v47 = vand.u32 4294901760, %v3552_v10  ;;  %v4526_v31 = vand.u32 4294901760, %v3578_v60  ;;  %2526 = vmatpush3.bf16.msra.mxu0 %v3903_v3 }
 0x174   :  { %1133 = vmatprep.mubr.f32.mxu0 %v1132_v61  ;;  %v1205_v30 = vand.u32 4294901760, %v1204_v58  ;;  %v1212_v36 = vand.u32 4294901760, %v1211_v43  ;;  %v4527_v56 = vand.u32 4294901760, %v3389_v32  ;;  %v4528_v29 = vand.u32 4294901760, %v3394_v34  ;;  %2528 = vmatprep.subr.bf16.mxu0 %v3910_v1  ;;  %v4531_v43 = vld [vmem:[#allocation34_spill] sm:$0xff] }
 0x175   :  { %v3930_v33 = vpack.c.bf16 %v4526_v31, %v4525_v47  ;;  %v2569_v10 = vpack.c.bf16 %v1198_v39, %v1191_v4  ;;  %v4529_v60 = vand.u32 4294901760, %v3595_v35  ;;  %v4530_v50 = vand.u32 4294901760, %v3597_v51  ;;  %2568 = vmatprep.subr.bf16.mxu1 %v2567_v21 }
 0x176   :  { %v1218_v53 = vsub.f32 %v3389_v32, %v4527_v56  ;;  %v1225_v19 = vsub.f32 %v3394_v34, %v4528_v29  ;;  %v1331_v52 = vand.u32 4294901760, %v1330_v38  ;;  %v1338_v22 = vand.u32 4294901760, %v1337_v63  ;;  %v4539_v29 = vld [vmem:[#allocation35_spill] sm:$0xff] }
 0x177   :  { %v3944_v49 = vpack.c.bf16 %v4530_v50, %v4529_v60  ;;  %v2571_v58 = vpack.c.bf16 %v1324_v54, %v1317_v13  ;;  %v4532_v56 = vand.u32 4294901760, %v4531_v43  ;;  %v4533_v47 = vand.u32 4294901760, %v3413_v6  ;;  %2530 = vmatpush3.bf16.msra.mxu0 %v3930_v33  ;;  %2570 = vmatpush3.bf16.msra.mxu1 %v2569_v10 }
 0x178   :  { %v4534_v4 = vand.u32 4294901760, %v3651_v12  ;;  %v4535_v35 = vand.u32 4294901760, %v3660_v48  ;;  %v2573_v51 = vpack.c.bf16 %v1212_v36, %v1205_v30  ;;  %v4536_v38 = vand.u32 4294901760, %v3662_v37 }
 0x179   :  { %v1344_v61 = vsub.f32 %v4531_v43, %v4532_v56  ;;  %v1351_v27 = vsub.f32 %v3413_v6, %v4533_v47  ;;  %v4537_v63 = vand.u32 4294901760, %v3688_v9  ;;  %v1219_v13 = vand.u32 4294901760, %v1218_v53  ;;  %2532 = vmatprep.subr.bf16.mxu0 %v3944_v49  ;;  %2572 = vmatprep.subr.bf16.mxu1 %v2571_v58 }
 0x17a   :  { %v3956_v39 = vpack.c.bf16 %v4535_v35, %v4534_v4  ;;  %v1226_v54 = vand.u32 4294901760, %v1225_v19  ;;  %v2575_v31 = vpack.c.bf16 %v1338_v22, %v1331_v52  ;;  %v4538_v12 = vand.u32 4294901760, %v3429_v59 }
 0x17b   :  { %v3963_v21 = vpack.c.bf16 %v4537_v63, %v4536_v38  ;;  %v4540_v60 = vand.u32 4294901760, %v4539_v29  ;;  %v1345_v37 = vand.u32 4294901760, %v1344_v61  ;;  %v1352_v36 = vand.u32 4294901760, %v1351_v27  ;;  %2574 = vmatpush3.bf16.msra.mxu1 %v2573_v51  ;;  %v4548_v38 = vld [vmem:[#allocation37_spill] sm:$0xff] }
 0x17c   :  { %v1232_v48 = vsub.f32 %v3429_v59, %v4538_v12  ;;  %v4541_v9 = vand.u32 4294901760, %v3441_v40  ;;  %v4542_v19 = vand.u32 4294901760, %v3446_v45  ;;  %2534 = vmatpush3.bf16.msra.mxu0 %v3956_v39  ;;  %v4543_v50 = vand.u32 4294901760, %v3725_v28  ;;  %2576 = vmatprep.subr.bf16.mxu1 %v2575_v31 }
 0x17d   :  { %v1239_v30 = vsub.f32 %v4539_v29, %v4540_v60  ;;  %v4544_v52 = vand.u32 4294901760, %v3727_v0  ;;  %v2577_v56 = vpack.c.bf16 %v1226_v54, %v1219_v13  ;;  %v4545_v58 = vand.u32 4294901760, %v3736_v23  ;;  %2536 = vmatprep.subr.bf16.mxu0 %v3963_v21  ;;  %v4553_v60 = vld [vmem:[#allocation24_spill] sm:$0xff] }
 0x17e   :  { %v1358_v53 = vsub.f32 %v3441_v40, %v4541_v9  ;;  %v1365_v10 = vsub.f32 %v3446_v45, %v4542_v19  ;;  %v4546_v61 = vand.u32 4294901760, %v3738_v62  ;;  %v1233_v27 = vand.u32 4294901760, %v1232_v48 }
 0x17f   :  { %v3983_v22 = vpack.c.bf16 %v4544_v52, %v4543_v50  ;;  %v1240_v4 = vand.u32 4294901760, %v1239_v30  ;;  %v4547_v35 = vand.u32 4294901760, %v3463_v44  ;;  %v4549_v0 = vand.u32 4294901760, %v4548_v38  ;;  %2578 = vmatpush3.bf16.msra.mxu1 %v2577_v56 }
 0x180   :  { %v3989_v47 = vpack.c.bf16 %v4546_v61, %v4545_v58  ;;  %v2579_v13 = vpack.c.bf16 %v1352_v36, %v1345_v37  ;;  %v1359_v23 = vand.u32 4294901760, %v1358_v53  ;;  %v1366_v54 = vand.u32 4294901760, %v1365_v10  ;;  %v4555_v53 = vld [vmem:[#allocation21_spill] sm:$0xff] }
 0x181   :  { %v1246_v28 = vsub.f32 %v3463_v44, %v4547_v35  ;;  %v1253_v63 = vsub.f32 %v4548_v38, %v4549_v0  ;;  %2538 = vmatpush3.bf16.msra.mxu0 %v3983_v22  ;;  %v4550_v62 = vand.u32 4294901760, %v3769_v17  ;;  %v4551_v51 = vand.u32 4294901760, %v3771_v16  ;;  %v4556_v16 = vld [vmem:[#allocation11_spill] sm:$0xff]  ;;  %v4560_v58 = vld [vmem:[#allocation13_spill] sm:$0xff] }
 0x182   :  { %v4552_v48 = vand.u32 4294901760, %v3783_v5  ;;  %v4554_v30 = vand.u32 4294901760, %v4553_v60  ;;  %2540 = vmatprep.subr.bf16.mxu0 %v3989_v47  ;;  %v2581_v31 = vpack.c.bf16 %v1240_v4, %v1233_v27  ;;  %v4013_v19 = vand.u32 4294901760, %v4555_v53  ;;  %2580 = vmatprep.subr.bf16.mxu1 %v2579_v13  ;;  %v4558_v5 = vld [vmem:[#allocation12_spill] sm:$0xff]  ;;  %v4562_v27 = vld [vmem:[#allocation14_spill] sm:$0xff]  ;;  %v4564_v0 = vld [vmem:[#allocation15_spill] sm:$0xff] }
 0x183   :  { %v4003_v12 = vpack.c.bf16 %v4551_v51, %v4550_v62  ;;  %v1247_v37 = vand.u32 4294901760, %v1246_v28  ;;  %v1254_v36 = vand.u32 4294901760, %v1253_v63  ;;  %v2583_v17 = vpack.c.bf16 %v1366_v54, %v1359_v23  ;;  %v4566_v13 = vld [vmem:[#allocation16_spill] sm:$0xff]  ;;  %v4568_v51 = vld [vmem:[#allocation17_spill] sm:$0xff]  ;;  %v4570_v60 = vld [vmem:[#allocation18_spill] sm:$0xff] }
 0x184   :  { %v4009_v9 = vpack.c.bf16 %v4554_v30, %v4552_v48  ;;  %v4557_v10 = vand.u32 4294901760, %v4556_v16  ;;  %v4559_v50 = vand.u32 4294901760, %v4558_v5  ;;  %2582 = vmatpush3.bf16.msra.mxu1 %v2581_v31  ;;  %v4561_v61 = vand.u32 4294901760, %v4560_v58 }
 0x185   :  { %2542 = vmatpush3.bf16.msra.mxu0 %v4003_v12  ;;  %v2585_v56 = vpack.c.bf16 %v1254_v36, %v1247_v37  ;;  %v4563_v4 = vand.u32 4294901760, %v4562_v27  ;;  %v4031_v28 = vsub.f32 %v4555_v53, %v4013_v19  ;;  %2584 = vmatprep.subr.bf16.mxu1 %v2583_v17  ;;  %v4565_v63 = vand.u32 4294901760, %v4564_v0  ;;  %v4572_v37 = vld [vmem:[#allocation19_spill] sm:$0xff]  ;;  %v4574_v53 = vld [vmem:[#allocation33_spill] sm:$0xff] }
 0x186   :  { %v4020_v52 = vpack.c.bf16 %v4559_v50, %v4557_v10  ;;  %2544 = vmatprep.subr.bf16.mxu0 %v4009_v9  ;;  %v4567_v23 = vand.u32 4294901760, %v4566_v13  ;;  %v4569_v48 = vand.u32 4294901760, %v4568_v51  ;;  %v4571_v30 = vand.u32 4294901760, %v4570_v60  ;;  %v4577_v50 = vld [vmem:[#allocation41_spill] sm:$0xff]  ;;  %v4582_v13 = vld [vmem:[#allocation47_spill] sm:$0xff]  ;;  %v4583_v51 = vld [vmem:[#allocation48_spill] sm:$0xff] }
 0x187   :  { %v4027_v35 = vpack.c.bf16 %v4563_v4, %v4561_v61  ;;  %v1136_v62 = vand.u32 4294901760, %v4031_v28  ;;  %v4573_v36 = vand.u32 4294901760, %v4572_v37  ;;  %v4575_v17 = vand.u32 4294901760, %v4574_v53  ;;  %v4579_v61 = vld [vmem:[#allocation44_spill] sm:$0xff]  ;;  %v4580_v27 = vld [vmem:[#allocation45_spill] sm:$0xff]  ;;  %v4586_v37 = vld [vmem:[#allocation31_spill] sm:$0xff] }
 0x188   :  { %v4038_v54 = vpack.c.bf16 %v4567_v23, %v4565_v63  ;;  %2586 = vmatpush3.bf16.msra.mxu1 %v2585_v56  ;;  %v4047_v31 = vpack.c.bf16 %v4571_v30, %v4569_v48  ;;  %v4576_v10 = vand.u32 4294901760, %v3815_v15  ;;  %v4578_v56 = vld [vmem:[#allocation42_spill] sm:$0xff]  ;;  %v2589_v4 = vpack.c.bf16 %v4580_v27, %v4579_v61  ;;  %v4584_v48 = vld [vmem:[#allocation20_spill] sm:$0xff] }
 0x189   :  { %2546 = vmatpush3.bf16.msra.mxu0 %v4020_v52  ;;  %2620 = vmatprep.subr.bf16.mxu1 %v3873_v18  ;;  %v4055_v16 = vpack.c.bf16 %v4575_v17, %v4573_v36  ;;  %v1137_v5 = vsub.f32 %v4031_v28, %v1136_v62  ;;  %v2587_v58 = vpack.c.bf16 %v4578_v56, %v4577_v50  ;;  %v4581_v63 = vld [vmem:[#allocation46_spill] sm:$0xff]  ;;  %v4587_v53 = vld [vmem:[#allocation28_spill] sm:$0xff] }
 0x18a   :  { %2548 = vmatprep.subr.bf16.mxu0 %v4027_v35  ;;  %v2591_v23 = vpack.c.bf16 %v4582_v13, %v4581_v63  ;;  %v2593_v60 = vpack.c.bf16 %v4584_v48, %v4583_v51  ;;  %v4585_v30 = vld [vmem:[#allocation30_spill] sm:$0xff] }
 0x18b   :  { %1371 = vmatmul.mubr.f32.vlgmr.msra.gmra.mrb[6].mxu1 %v4013_v19  ;;  %v1138_v0 = vand.u32 4294901760, %v1137_v5  ;;  %v2595_v36 = vpack.c.bf16 %v4586_v37, %v4585_v30  ;;  %v4588_v17 = vld [vmem:[#allocation22_spill] sm:$0xff]  ;;  %v4589_v5 = vld [vmem:[#allocation23_spill] sm:$0xff] }
 0x18c   :  { %2622 = vmatpush3.bf16.msra.mxu1 %v3903_v3  ;;  %1613 = vmatprep.mubr.f32.mxu1 %v4576_v10  ;;  %v2597_v10 = vpack.c.bf16 %v4588_v17, %v4587_v53 }
 0x18d   :  { %2550 = vmatpush3.bf16.msra.mxu0 %v4038_v54  ;;  %2624 = vmatprep.subr.bf16.mxu1 %v3910_v1 }
 0x18e   :  { %2552 = vmatprep.subr.bf16.mxu0 %v4047_v31 }
 0x190   :  { %2626 = vmatpush3.bf16.msra.mxu1 %v3930_v33 }
 0x191   :  { %2554 = vmatpush3.bf16.msra.mxu0 %v4055_v16  ;;  %2628 = vmatprep.subr.bf16.mxu1 %v3944_v49 }
 0x192   :  { %2588 = vmatprep.subr.bf16.mxu0 %v2587_v58  ;;  %v2601_v58 = vpack.c.bf16 %v3809_v11, %v3804_v24 }
 0x194   :  { %1139 = vmatmul.mubr.f32.vlgmr.msra.gmra.mrb[6].mxu0 %v1138_v0  ;;  %2630 = vmatpush3.bf16.msra.mxu1 %v3956_v39  ;;  %v2605_v0 = vpack.c.bf16 %v3846_v41, %v3841_v42  ;;  %v4610_v42 = vld [vmem:[#allocation39_spill] sm:$0xff] }
 0x195   :  { %2590 = vmatpush3.bf16.msra.mxu0 %v2589_v4  ;;  %1506 = vmatprep.mubr.f32.mxu0 %v3815_v15  ;;  %v2599_v15 = vpack.c.bf16 %v3779_v25, %v4589_v5  ;;  %v2603_v4 = vpack.c.bf16 %v3826_v57, %v3821_v2  ;;  %v4609_v57 = vld [vmem:[#allocation38_spill] sm:$0xff]  ;;  %v4612_v41 = vld [vmem:[#allocation43_spill] sm:$0xff] }
 0x196   :  { %2592 = vmatprep.subr.bf16.mxu0 %v2591_v23  ;;  %2632 = vmatprep.subr.bf16.mxu1 %v3963_v21  ;;  %v2607_v23 = vpack.c.bf16 %v3860_v26, %v3855_v14 }
 0x198   :  { %2634 = vmatpush3.bf16.msra.mxu1 %v3983_v22 }
 0x199   :  { %2594 = vmatpush3.bf16.msra.mxu0 %v2593_v60  ;;  %2636 = vmatprep.subr.bf16.mxu1 %v3989_v47  ;;  %v2609_v60 = vpack.c.bf16 %v3394_v34, %v3389_v32  ;;  %v2615_v32 = vpack.c.bf16 %v3446_v45, %v3441_v40  ;;  %v2617_v34 = vpack.c.bf16 %v4548_v38, %v3463_v44  ;;  %v4592_v45 = vand.u32 4294901760, %v4579_v61 }
 0x19a   :  { %2596 = vmatprep.subr.bf16.mxu0 %v2595_v36  ;;  %v2611_v36 = vpack.c.bf16 %v3413_v6, %v4531_v43  ;;  %v4590_v6 = vand.u32 4294901760, %v4577_v50  ;;  %v4593_v40 = vand.u32 4294901760, %v4580_v27  ;;  %v4594_v44 = vand.u32 4294901760, %v4581_v63 }
 0x19b   :  { %v4597_v38 = vand.u32 4294901760, %v4584_v48  ;;  %v4599_v50 = vand.u32 4294901760, %v4586_v37  ;;  %v4602_v61 = vand.u32 4294901760, %v4589_v5  ;;  %v4604_v63 = vand.u32 4294901760, %v3804_v24 }
 0x19c   :  { %2638 = vmatpush3.bf16.msra.mxu1 %v4003_v12  ;;  %v4607_v24 = vand.u32 4294901760, %v3860_v26  ;;  %v4611_v26 = vld [vmem:[#allocation40_spill] sm:$0xff] }
 0x19d   :  { %2598 = vmatpush3.bf16.msra.mxu0 %v2597_v10  ;;  %2640 = vmatprep.subr.bf16.mxu1 %v4009_v9  ;;  %v2613_v10 = vpack.c.bf16 %v4539_v29, %v3429_v59  ;;  %v4591_v59 = vand.u32 4294901760, %v4578_v56 }
 0x19e   :  { %2600 = vmatprep.subr.bf16.mxu0 %v2599_v15 }
 0x19f   :  { %v2651_v43 = vpack.c.bf16 %v4591_v59, %v4590_v6 }
 0x1a0   :  { %2642 = vmatpush3.bf16.msra.mxu1 %v4020_v52 }
 0x1a1   :  { %2602 = vmatpush3.bf16.msra.mxu0 %v2601_v58  ;;  %2644 = vmatprep.subr.bf16.mxu1 %v4027_v35 }
 0x1a2   :  { %2604 = vmatprep.subr.bf16.mxu0 %v2603_v4 }
 0x1a4   :  { %2646 = vmatpush3.bf16.msra.mxu1 %v4038_v54 }
 0x1a5   :  { %2606 = vmatpush3.bf16.msra.mxu0 %v2605_v0  ;;  %2648 = vmatprep.subr.bf16.mxu1 %v4047_v31 }
 0x1a6   :  { %2608 = vmatprep.subr.bf16.mxu0 %v2607_v23 }
 0x1a8   :  { %2650 = vmatpush3.bf16.msra.mxu1 %v4055_v16 }
 0x1a9   :  { %2610 = vmatpush3.bf16.msra.mxu0 %v2609_v60  ;;  %2684 = vmatprep.subr.bf16.mxu1 %v3873_v18  ;;  %v2653_v18 = vpack.c.bf16 %v4593_v40, %v4592_v45 }
 0x1aa   :  { %2612 = vmatprep.subr.bf16.mxu0 %v2611_v36 }
 0x1ab   :  { %1617 = vmatmul.mubr.f32.vlgmr.msra.gmra.mrb[8].mxu1 %v1136_v62 }
 0x1ac   :  { %2686 = vmatpush3.bf16.msra.mxu1 %v3903_v3  ;;  %1887 = vmatprep.mubr.f32.mxu1 %v3774_v7  ;;  %v4595_v3 = vand.u32 4294901760, %v4582_v13 }
 0x1ad   :  { %2614 = vmatpush3.bf16.msra.mxu0 %v2613_v10  ;;  %2688 = vmatprep.subr.bf16.mxu1 %v3910_v1  ;;  %v4596_v1 = vand.u32 4294901760, %v4583_v51  ;;  %v4606_v51 = vand.u32 4294901760, %v3821_v2  ;;  %v4608_v2 = vld [vmem:[#allocation36_spill] sm:$0xff] }
 0x1ae   :  { %2616 = vmatprep.subr.bf16.mxu0 %v2615_v32  ;;  %v2655_v29 = vpack.c.bf16 %v4595_v3, %v4594_v44 }
 0x1af   :  { %v2657_v62 = vpack.c.bf16 %v4597_v38, %v4596_v1 }
 0x1b0   :  { %2690 = vmatpush3.bf16.msra.mxu1 %v3930_v33  ;;  %v4598_v33 = vand.u32 4294901760, %v4585_v30 }
 0x1b1   :  { %2618 = vmatpush3.bf16.msra.mxu0 %v2617_v34  ;;  %2692 = vmatprep.subr.bf16.mxu1 %v3944_v49  ;;  %v4600_v49 = vand.u32 4294901760, %v4587_v53 }
 0x1b2   :  { %2652 = vmatprep.subr.bf16.mxu0 %v2651_v43  ;;  %v2659_v56 = vpack.c.bf16 %v4599_v50, %v4598_v33 }
 0x1b4   :  { %1509 = vmatmul.mubr.f32.vlgmr.msra.gmra.mrb[8].mxu0 %v4031_v28  ;;  %2694 = vmatpush3.bf16.msra.mxu1 %v3956_v39  ;;  %v4603_v39 = vand.u32 4294901760, %v3779_v25  ;;  %v2669_v25 = vpack.c.bf16 %v1210_v8, %v1203_v46 }
 0x1b5   :  { %2654 = vmatpush3.bf16.msra.mxu0 %v2653_v18  ;;  %1783 = vmatprep.mubr.f32.mxu0 %v3774_v7  ;;  %v4601_v7 = vand.u32 4294901760, %v4588_v17 }
 0x1b6   :  { %2656 = vmatprep.subr.bf16.mxu0 %v2655_v29  ;;  %2696 = vmatprep.subr.bf16.mxu1 %v3963_v21  ;;  %v2663_v27 = vpack.c.bf16 %v4603_v39, %v4602_v61  ;;  %v4605_v21 = vand.u32 4294901760, %v3809_v11  ;;  %v2671_v11 = vpack.c.bf16 %v4607_v24, %v1329_v55 }
 0x1b7   :  { %v2661_v28 = vpack.c.bf16 %v4601_v7, %v4600_v49 }
 0x1b8   :  { %2698 = vmatpush3.bf16.msra.mxu1 %v3983_v22  ;;  %v2665_v13 = vpack.c.bf16 %v4605_v21, %v4604_v63  ;;  %v2667_v22 = vpack.c.bf16 %v1322_v20, %v4606_v51 }
 0x1b9   :  { %2658 = vmatpush3.bf16.msra.mxu0 %v2657_v62  ;;  %2700 = vmatprep.subr.bf16.mxu1 %v3989_v47 }
 0x1ba   :  { %2660 = vmatprep.subr.bf16.mxu0 %v2659_v56 }
 0x1bc   :  { %2702 = vmatpush3.bf16.msra.mxu1 %v4003_v12 }
 0x1bd   :  { %2662 = vmatpush3.bf16.msra.mxu0 %v2661_v28  ;;  %2704 = vmatprep.subr.bf16.mxu1 %v4009_v9 }
 0x1be   :  { %2664 = vmatprep.subr.bf16.mxu0 %v2663_v27 }
 0x1c0   :  { %2706 = vmatpush3.bf16.msra.mxu1 %v4020_v52 }
 0x1c1   :  { %2666 = vmatpush3.bf16.msra.mxu0 %v2665_v13  ;;  %2708 = vmatprep.subr.bf16.mxu1 %v4027_v35 }
 0x1c2   :  { %2668 = vmatprep.subr.bf16.mxu0 %v2667_v22 }
 0x1c4   :  { %2710 = vmatpush3.bf16.msra.mxu1 %v4038_v54 }
 0x1c5   :  { %2670 = vmatpush3.bf16.msra.mxu0 %v2669_v25  ;;  %2712 = vmatprep.subr.bf16.mxu1 %v4047_v31 }
 0x1c6   :  { %2672 = vmatprep.subr.bf16.mxu0 %v2671_v11 }
 0x1c8   :  { %2714 = vmatpush3.bf16.msra.mxu1 %v4055_v16 }
 0x1c9   :  { %2674 = vmatpush3.bf16.msra.mxu0 %v4608_v2 }
 0x1ca   :  { %2676 = vmatprep.subr.bf16.mxu0 %v4609_v57 }
 0x1cb   :  { %1889 = vmatmul.mubr.f32.vlgmr.msra.gmra.mrb[10].mxu1 %v4013_v19 }
 0x1cd   :  { %2678 = vmatpush3.bf16.msra.mxu0 %v4610_v42 }
 0x1ce   :  { %2680 = vmatprep.subr.bf16.mxu0 %v4611_v26 }
 0x1d1   :  { %2682 = vmatpush3.bf16.msra.mxu0 %v4612_v41 }
 0x1d4   :  { %1785 = vmatmul.mubr.f32.vlgmr.msra.gmra.mrb[10].mxu0 %v4013_v19 }
 0x1f7   :  { %v1978_v20 = vpop.f32.mrb[0].mxu1 }
 0x1f8   :  { %v1979_v8 = vpop.f32.mrb[1].mxu1 }
 0x1f9   :  { %v1980_v14 = vadd.f32 %v1979_v8, %v1978_v20 }
 0x1ff   :  { %v1943_v46 = vpop.f32.mrb[0].mxu0 }
 0x200   :  { %v1944_v55 = vpop.f32.mrb[1].mxu0 }
 0x201   :  { %v1945_v47 = vadd.f32 %v1944_v55, %v1943_v46 }
 0x203   :  { %v511_v12 = vadd.f32 %v1980_v14, %v1945_v47 }
 0x217   :  { %v2048_v9 = vpop.f32.mrb[2].mxu1 }
 0x218   :  { %v2049_v52 = vpop.f32.mrb[3].mxu1 }
 0x219   :  { %v2050_v35 = vadd.f32 %v2049_v52, %v2048_v9 }
 0x221   :  { %v2013_v54 = vpop.f32.mrb[2].mxu0 }
 0x222   :  { %v2014_v31 = vpop.f32.mrb[3].mxu0 }
 0x223   :  { %v2015_v16 = vadd.f32 %v2014_v31, %v2013_v54 }
 0x225   :  { %v649_v48 = vadd.f32 %v2015_v16, %v511_v12 }
 0x227   :  { %v757_v30 = vadd.f32 %v2050_v35, %v649_v48 }
 0x23c   :  { %v2118_v37 = vpop.f32.mrb[4].mxu1 }
 0x23d   :  { %v2119_v53 = vpop.f32.mrb[5].mxu1 }
 0x23e   :  { %v2120_v17 = vadd.f32 %v2119_v53, %v2118_v37 }
 0x242   :  { %v2083_v5 = vpop.f32.mrb[4].mxu0 }
 0x243   :  { %v2084_v19 = vpop.f32.mrb[5].mxu0 }
 0x244   :  { %v2085_v15 = vadd.f32 %v2084_v19, %v2083_v5 }
 0x246   :  { %v925_v58 = vadd.f32 %v2085_v15, %v757_v30 }
 0x248   :  { %v1029_v4 = vadd.f32 %v2120_v17, %v925_v58 }
 0x25e   :  { %v2188_v0 = vpop.f32.mrb[6].mxu1 }
 0x25f   :  { %v2189_v23 = vpop.f32.mrb[7].mxu1 }
 0x260   :  { %v2190_v60 = vadd.f32 %v2189_v23, %v2188_v0 }
 0x267   :  { %v2153_v36 = vpop.f32.mrb[6].mxu0 }
 0x268   :  { %v2154_v10 = vpop.f32.mrb[7].mxu0 }
 0x269   :  { %v2155_v32 = vadd.f32 %v2154_v10, %v2153_v36 }
 0x26b   :  { %v1141_v34 = vadd.f32 %v2155_v32, %v1029_v4 }
 0x26d   :  { %v1373_v6 = vadd.f32 %v2190_v60, %v1141_v34 }
 0x27e   :  { %v2258_v59 = vpop.f32.mrb[8].mxu1 }
 0x27f   :  { %v2259_v43 = vpop.f32.mrb[9].mxu1 }
 0x280   :  { %v2260_v45 = vadd.f32 %v2259_v43, %v2258_v59 }
 0x287   :  { %v2223_v40 = vpop.f32.mrb[8].mxu0 }
 0x288   :  { %v2224_v18 = vpop.f32.mrb[9].mxu0 }
 0x289   :  { %v2225_v44 = vadd.f32 %v2224_v18, %v2223_v40 }
 0x28b   :  { %v1511_v3 = vadd.f32 %v2225_v44, %v1373_v6 }
 0x28d   :  { %v1619_v29 = vadd.f32 %v2260_v45, %v1511_v3 }
 0x29e   :  { %v2328_v1 = vpop.f32.mrb[10].mxu1 }
 0x29f   :  { %v2329_v38 = vpop.f32.mrb[11].mxu1 }
 0x2a0   :  { %v2330_v62 = vadd.f32 %v2329_v38, %v2328_v1 }
 0x2a7   :  { %v2293_v33 = vpop.f32.mrb[10].mxu0 }
 0x2a8   :  { %v2294_v50 = vpop.f32.mrb[11].mxu0 }
 0x2a9   :  { %v2295_v56 = vadd.f32 %v2294_v50, %v2293_v33 }
 0x2ab   :  { %v1787_v49 = vadd.f32 %v2295_v56, %v1619_v29 }
 0x2ad   :  { %v1891_v7 = vadd.f32 %v2330_v62, %v1787_v49 }
 0x2af   :  { %1894 = vst [vmem:[#allocation7] sm:$0xf] %v1891_v7 }
 0x2b0   :  { %2779 = shalt.err (!%p2776_p6)
}
 0x2b1   :  { %s2780_s12 = scalar_lea.hbm %s4194_s2, 64 }
 0x2b2   :  { %p2781_p7 = scmp.ne.s32.totalorder %s4194_s2, %s2780_s12  ;;  %p2784_p8 = scmp.lt.u32.totalorder %s2780_s12, %s4194_s2 }
 0x2b4   :  { %p2786_p9 = pnand %p2784_p8, %p2781_p7 }
 0x2b6   :  { %2789 = shalt.err (!%p2786_p9)
}
 0x2b7   :  { %1904 = dma.vmem_to_hbm [thread:$0]  %s1902_s8, 64, %s4194_s2, [#allocation4]  }
 0x2b8   :  { %2794 = dma.done.wait [#allocation4], 64  }
 0x2b9   :  { %2795 = vsyncadd [#allocation4], 4294967232 }
 0x2ba   :  { %1908 = vsyncpa [#allocation3], 1 }
 0x2bb   :  { %1909 = vsyncpa [#allocation6], 1 }
 0x2bc   :  { %1910 = vsyncpa [#allocation4], 1 }

</bundles_post_ra>
